<compile_context>
chip_gen: v7x
topology: tpu7x:2x2x1
jax: 0.10.0
libtpu: 0.0.40
codegen_flags: <defaults>
</compile_context>

<pallas_src>
import functools

import jax
import jax.numpy as jnp
from jax.experimental import pallas as pl
from jax.experimental.pallas import tpu as pltpu

LEAKY_SLOPE = 0.01   # torch.nn.LeakyReLU default
LN_EPS = 1e-5        # torch.nn.LayerNorm default


def _round_up(x, m):
    return (x + m - 1) // m * m


def _leaky_relu(x):
    return jnp.where(x >= 0, x, LEAKY_SLOPE * x)


def _layer_norm(x, gamma, beta):
    mu = jnp.mean(x, axis=-1, keepdims=True)
    var = jnp.mean((x - mu) ** 2, axis=-1, keepdims=True)
    return (x - mu) * jax.lax.rsqrt(var + LN_EPS) * gamma + beta


# ----------------------------------------------------------------------------
# Pallas kernel: one batch per grid step.
#   scalar prefetch : starts (B, E_pad) i32, ends (B, E_pad) i32, pron (B,) i32
#   mw_ref          : (E_pad, S) f32   span-mean weights for this batch
#   emb_ref         : (S, H)    f32    this batch's BERT hidden states
#   se_ref          : (2*E_pad, H) f32 scratch for gathered start / end rows
# ----------------------------------------------------------------------------
def cr_head_kernel(E_pad,
                   starts_ref, ends_ref, pron_ref,        # SMEM (scalar prefetch)
                   mw_ref, emb_ref,                       # per-batch VMEM blocks
                   w1s_ref, w1e_ref, w1m_ref, b1e_ref, ge_ref, be_ref,
                   w2e_ref, b2e_ref,
                   w1p_ref, b1p_ref, gp_ref, bp_ref, w2p_ref, b2p_ref,
                   wl1p_ref, wl1e_ref, bl1_ref, wc_ref, bc_ref,
                   out_ref,
                   se_ref):
    f32, bf16 = jnp.float32, jnp.bfloat16
    b = pl.program_id(0)

    # ---- _retrieve_embeddings -------------------------------------------
    # start / end rows: direct dynamic-row gathers from this batch's (S, H)
    # tile (no one-hot MXU matmuls).  Destination rows are static.
    for e in range(E_pad):
        s = starts_ref[b, e]
        t = ends_ref[b, e]
        # (0, 0) is the padded-entity convention -> zero embedding, matching
        # the PyTorch torch.zeros(3*H) rows.
        vf = jnp.logical_or(s != 0, t != 0).astype(f32)
        se_ref[e:e + 1, :] = emb_ref[pl.ds(s, 1), :] * vf
        # end-1 clamped to 0 (padded entities are zeroed by vf anyway).
        se_ref[E_pad + e:E_pad + e + 1, :] = (
            emb_ref[pl.ds(jnp.maximum(t - 1, 0), 1), :] * vf)

    start_e = se_ref[0:E_pad, :]                            # (E_pad, H) f32
    end_e = se_ref[E_pad:2 * E_pad, :]                      # (E_pad, H) f32
    # Span mean: the only gather kept on the MXU, in f32 (weights = 1/len).
    mean_e = jnp.dot(mw_ref[...], emb_ref[...], preferred_element_type=f32)
    pron_e = emb_ref[pl.ds(pron_ref[b], 1), :]              # (1, H) f32

    # ---- ffnn_entities: Linear(3H->H) as three split matmuls (no concat),
    # LayerNorm -> LeakyReLU -> Dropout(id) -> Linear(H->HH_pad).
    h = (jnp.dot(start_e.astype(bf16), w1s_ref[...], preferred_element_type=f32)
         + jnp.dot(end_e.astype(bf16), w1e_ref[...], preferred_element_type=f32)
         + jnp.dot(mean_e.astype(bf16), w1m_ref[...], preferred_element_type=f32)
         + b1e_ref[...])
    # NOTE: rows of fully padded entities reduce to the bias; LayerNorm stays
    # finite (eps) and row-padding beyond E is sliced away by the wrapper.
    h = _leaky_relu(_layer_norm(h, ge_ref[...], be_ref[...]))
    x_ent = (jnp.dot(h.astype(bf16), w2e_ref[...], preferred_element_type=f32)
             + b2e_ref[...])                                # (E_pad, HH_pad)

    # ---- ffnn_pronoun on the single pronoun row of this batch.
    hp = (jnp.dot(pron_e.astype(bf16), w1p_ref[...], preferred_element_type=f32)
          + b1p_ref[...])
    hp = _leaky_relu(_layer_norm(hp, gp_ref[...], bp_ref[...]))
    x_pron = (jnp.dot(hp.astype(bf16), w2p_ref[...], preferred_element_type=f32)
              + b2p_ref[...])                               # (1, HH_pad)

    # ---- linear1 on the virtual concat [x_pron, x_ent]: apply the pronoun
    # half to the single row first, then broadcast-add over entity rows
    # (replication is free with the per-batch grid).
    zp = jnp.dot(x_pron.astype(bf16), wl1p_ref[...], preferred_element_type=f32)
    ze = jnp.dot(x_ent.astype(bf16), wl1e_ref[...], preferred_element_type=f32)
    z = _leaky_relu(ze + zp + bl1_ref[...])                 # (E_pad, BIL)

    # ---- classifier (output columns padded to a lane-dense 128).
    out = (jnp.dot(z.astype(bf16), wc_ref[...], preferred_element_type=f32)
           + bc_ref[...])
    out_ref[...] = out.astype(out_ref.dtype)


# ----------------------------------------------------------------------------
# Wrapper: build per-batch operands, single pallas_call over grid=(B,).
# ----------------------------------------------------------------------------
def cr_head_forward(bert_out, ent_starts, ent_ends, pron_off, params):
    B, S, H = bert_out.shape
    E = ent_starts.shape[1]
    E_pad = _round_up(E, 8)
    HH = params["w2_ent"].shape[1]
    HH_pad = _round_up(HH, 128)
    BIL = params["w_lin1"].shape[1]
    num_out = params["w_cls"].shape[1]
    N_PAD = _round_up(num_out, 128)

    f32, bf = jnp.float32, jnp.bfloat16

    # -- scalar-prefetch offsets (int32; (0,0) marks padded entities) --------
    starts_p = jnp.pad(ent_starts, ((0, 0), (0, E_pad - E))).astype(jnp.int32)
    ends_p = jnp.pad(ent_ends, ((0, 0), (0, E_pad - E))).astype(jnp.int32)
    pron = pron_off.astype(jnp.int32)

    # -- span-mean weights, per batch, f32 (only reduction left on the MXU) --
    pos = jnp.arange(S, dtype=jnp.int32)
    valid = ~((starts_p == 0) & (ends_p == 0))
    span = ((pos[None, None, :] >= starts_p[..., None]) &
            (pos[None, None, :] < ends_p[..., None]) & valid[..., None])
    length = jnp.maximum(ends_p - starts_p, 1).astype(f32)
    mw = span.astype(f32) / length[..., None]               # (B, E_pad, S)

    emb = bert_out.astype(f32)                              # (B, S, H)

    # -- weights: bf16 MXU operands; HH / num_out zero-padded to 128 lanes ---
    w1 = params["w1_ent"]                                   # (3H, H)
    w1s, w1e, w1m = (w1[0:H].astype(bf), w1[H:2 * H].astype(bf),
                     w1[2 * H:3 * H].astype(bf))
    w2e = jnp.pad(params["w2_ent"], ((0, 0), (0, HH_pad - HH))).astype(bf)
    b2e = jnp.pad(params["b2_ent"], ((0, 0), (0, HH_pad - HH)))
    w2p = jnp.pad(params["w2_pron"], ((0, 0), (0, HH_pad - HH))).astype(bf)
    b2p = jnp.pad(params["b2_pron"], ((0, 0), (0, HH_pad - HH)))
    wl1 = params["w_lin1"]                                  # (2*HH, BIL)
    wl1p = jnp.pad(wl1[:HH], ((0, HH_pad - HH), (0, 0))).astype(bf)
    wl1e = jnp.pad(wl1[HH:], ((0, HH_pad - HH), (0, 0))).astype(bf)
    wc = jnp.pad(params["w_cls"], ((0, 0), (0, N_PAD - num_out))).astype(bf)
    bc = jnp.pad(params["b_cls"], ((0, 0), (0, N_PAD - num_out)))

    param_inputs = [
        w1s, w1e, w1m, params["b1_ent"], params["ln_g_ent"], params["ln_b_ent"],
        w2e, b2e,
        params["w1_pron"].astype(bf), params["b1_pron"],
        params["ln_g_pron"], params["ln_b_pron"], w2p, b2p,
        wl1p, wl1e, params["b_lin1"],
        wc, bc,
    ]

    per_b = lambda b, *_: (b, 0, 0)
    in_specs = (
        [pl.BlockSpec((None, E_pad, S), per_b),             # mw  (per batch)
         pl.BlockSpec((None, S, H), per_b)]                 # emb (per batch)
        # parameters: full-shape blocks, constant index -> fetched once and
        # kept resident across the batch grid (no per-step re-DMA).
        + [pl.BlockSpec(p.shape, lambda b, *_: (0, 0)) for p in param_inputs])

    grid_spec = pltpu.PrefetchScalarGridSpec(
        num_scalar_prefetch=3,
        grid=(B,),
        in_specs=in_specs,
        out_specs=pl.BlockSpec((None, E_pad, N_PAD), per_b),
        scratch_shapes=[pltpu.VMEM((2 * E_pad, H), f32)],
    )

    # VMEM budget: params (double-buffered) + per-batch tiles + scratch, with
    # 2x headroom; never below the 32 MiB default, capped at v7x's 64 MiB.
    param_bytes = sum(int(p.size) * p.dtype.itemsize for p in param_inputs)
    step_bytes = (2 * param_bytes
                  + 2 * (E_pad * S + S * H + E_pad * N_PAD) * 4
                  + 2 * E_pad * H * 4)
    vmem_limit = int(min(64 * 2 ** 20, max(32 * 2 ** 20, 2 * step_bytes)))

    flops = 2 * B * (E_pad * S * H                 # span-mean contraction
                     + 3 * E_pad * H * H           # entity Linear(3H->H), split
                     + E_pad * H * HH_pad          # entity Linear(H->HH)
                     + H * H + H * HH_pad          # pronoun FFNN (1 row)
                     + (E_pad + 1) * HH_pad * BIL  # linear1, split halves
                     + E_pad * BIL * N_PAD)        # classifier
    bytes_accessed = (sum(int(a.size) * a.dtype.itemsize
                          for a in [mw, emb] + param_inputs)
                      + B * E_pad * N_PAD * 4)
    cost = pl.CostEstimate(flops=int(flops),
                           transcendentals=int(B * (E_pad + 1)),
                           bytes_accessed=int(bytes_accessed))

    out = pl.pallas_call(
        functools.partial(cr_head_kernel, E_pad),
        out_shape=jax.ShapeDtypeStruct((B, E_pad, N_PAD), f32),
        grid_spec=grid_spec,
        compiler_params=pltpu.CompilerParams(
            dimension_semantics=("parallel",),     # batch steps are independent
            vmem_limit_bytes=vmem_limit),
        cost_estimate=cost,
    )(starts_p, ends_p, pron, mw, emb, *param_inputs)

    # Un-pad: (B, E_pad, N_PAD) -> (B, E, num_out)
    return out[:, :E, :num_out]


def cr_model_forward(params, sample):
    x = sample["features"]                               # (B, S) int32 token ids
    ent_starts, ent_ends = sample["entities_offsets"]    # (B, E) each
    pron_off = sample["pronouns_offset"]                 # (B,)

    # TODO(synk): the pretrained BertModel encoder has no clean Pallas
    # equivalent here; a deterministic synthetic embedding table stands in for
    # bert_outputs.last_hidden_state (output_strategy == 'last'); the attention
    # mask (x > 0) is only consumed by the real encoder.
    bert_out = params["bert_embedding_table"][x]          # (B, S, H)
    return cr_head_forward(bert_out, ent_starts, ent_ends, pron_off, params)


# ----------------------------------------------------------------------------
# Pure-JAX reference: mirrors the PyTorch module (gathers / mean in f32,
# concat, unsqueeze/expand) with the same bf16 quantization the kernel applies
# at MXU boundaries, so the comparison isolates kernel bugs.
# ----------------------------------------------------------------------------
def _q(a):
    return a.astype(jnp.bfloat16).astype(jnp.float32)


def reference_forward(params, sample):
    x = sample["features"]
    ent_starts, ent_ends = sample["entities_offsets"]
    pron_off = sample["pronouns_offset"]

    emb = params["bert_embedding_table"][x].astype(jnp.float32)   # (B, S, H)
    B, S, H = emb.shape

    valid = (~((ent_starts == 0) & (ent_ends == 0))).astype(jnp.float32)
    b_idx = jnp.arange(B)[:, None]
    start_e = emb[b_idx, ent_starts] * valid[..., None]
    # end-1 clamped to 0 under the (0,0) padding convention (same as kernel).
    end_e = emb[b_idx, jnp.maximum(ent_ends - 1, 0)] * valid[..., None]
    pos = jnp.arange(S)
    span = ((pos[None, None, :] >= ent_starts[..., None]) &
            (pos[None, None, :] < ent_ends[..., None]) &
            (valid[..., None] > 0)).astype(jnp.float32)
    length = jnp.maximum(ent_ends - ent_starts, 1).astype(jnp.float32)
    mean_e = jnp.einsum("bes,bsh->beh", span, emb) / length[..., None]
    pron_e = emb[jnp.arange(B), pron_off]                 # (B, H)

    ent_emb = jnp.concatenate([start_e, end_e, mean_e], axis=-1)   # (B, E, 3H)

    def ffnn(inp, w1, b1, g, be_, w2, b2):
        h = _q(inp) @ _q(w1) + b1
        h = _leaky_relu(_layer_norm(h, g, be_))
        return _q(h) @ _q(w2) + b2

    x_ent = ffnn(ent_emb, params["w1_ent"], params["b1_ent"],
                 params["ln_g_ent"], params["ln_b_ent"],
                 params["w2_ent"], params["b2_ent"])
    x_pron = ffnn(pron_e, params["w1_pron"], params["b1_pron"],
                  params["ln_g_pron"], params["ln_b_pron"],
                  params["w2_pron"], params["b2_pron"])
    x_pron = jnp.broadcast_to(x_pron[:, None, :],
                              (B, x_ent.shape[1], x_pron.shape[-1]))

    z = jnp.concatenate([x_pron, x_ent], axis=-1)
    z = _leaky_relu(_q(z) @ _q(params["w_lin1"]) + params["b_lin1"])
    return _q(z) @ _q(params["w_cls"]) + params["b_cls"]


# ----------------------------------------------------------------------------
# Deterministic parameter init (synthetic; shapes follow Entity_Resolution_Head).
# ----------------------------------------------------------------------------
def init_params(key, vocab, H, head_hidden, bilinear, num_out):
    ks = jax.random.split(key, 12)

    def dense(k, fin, fout):
        return jax.random.normal(k, (fin, fout), jnp.float32) * 0.05

    def bias(k, fout):
        return jax.random.normal(k, (1, fout), jnp.float32) * 0.05

    return {
        "bert_embedding_table": jax.random.normal(ks[0], (vocab, H), jnp.float32) * 0.5,
        # ffnn_entities: Linear(3H->H), LayerNorm(H), Linear(H->head_hidden)
        "w1_ent": dense(ks[1], 3 * H, H), "b1_ent": bias(ks[2], H),
        "ln_g_ent": jnp.ones((1, H), jnp.float32),
        "ln_b_ent": jnp.zeros((1, H), jnp.float32),
        "w2_ent": dense(ks[3], H, head_hidden), "b2_ent": bias(ks[4], head_hidden),
        # ffnn_pronoun: Linear(H->H), LayerNorm(H), Linear(H->head_hidden)
        "w1_pron": dense(ks[5], H, H), "b1_pron": bias(ks[6], H),
        "ln_g_pron": jnp.ones((1, H), jnp.float32),
        "ln_b_pron": jnp.zeros((1, H), jnp.float32),
        "w2_pron": dense(ks[7], H, head_hidden), "b2_pron": bias(ks[8], head_hidden),
        # linear1: Linear(2*head_hidden -> 512), classifier: Linear(512 -> num_out)
        "w_lin1": dense(ks[9], 2 * head_hidden, bilinear), "b_lin1": bias(ks[10], bilinear),
        "w_cls": dense(ks[11], bilinear, num_out),
        "b_cls": jnp.zeros((1, num_out), jnp.float32),
    }


if __name__ == "__main__":
    B, S, H, E = 2, 16, 32, 4          # batch, seq len, bert hidden, max entities
    HEAD_HIDDEN, BILINEAR, NUM_OUT, VOCAB = 16, 512, 2, 64

    key = jax.random.PRNGKey(0)
    k_par, k_tok = jax.random.split(key)
    params = init_params(k_par, VOCAB, H, HEAD_HIDDEN, BILINEAR, NUM_OUT)

    tokens = jax.random.randint(k_tok, (B, S), 1, VOCAB).astype(jnp.int32)
    ent_starts = jnp.array([[1, 4, 9, 0], [2, 6, 0, 0]], dtype=jnp.int32)
    ent_ends = jnp.array([[3, 7, 12, 0], [5, 10, 0, 0]], dtype=jnp.int32)  # (0,0) = padding
    pron_off = jnp.array([5, 8], dtype=jnp.int32)

    sample = {
        "features": tokens,
        "entities_offsets": (ent_starts, ent_ends),
        "pronouns_offset": pron_off,
    }

    out = jax.block_until_ready(cr_model_forward(params, sample))
    ref = reference_forward(params, sample)

    assert out.shape == (B, E, NUM_OUT), out.shape
    assert jnp.allclose(out, ref, atol=2e-2, rtol=2e-2), "kernel/reference mismatch"
    print("KERNEL_OK")
</pallas_src>

<mosaic_0001>
module attributes {stable_mosaic.version = 11 : i64} {
  func.func @cr_head_kernel(%arg0: i32, %arg1: memref<2x8xi32, #tpu.memory_space<smem>>, %arg2: memref<2x8xi32, #tpu.memory_space<smem>>, %arg3: memref<2xi32, #tpu.memory_space<smem>>, %arg4: memref<1x8x16xf32, #tpu.memory_space<vmem>>, %arg5: memref<1x16x32xf32, #tpu.memory_space<vmem>>, %arg6: memref<32x32xbf16, #tpu.memory_space<vmem>>, %arg7: memref<32x32xbf16, #tpu.memory_space<vmem>>, %arg8: memref<32x32xbf16, #tpu.memory_space<vmem>>, %arg9: memref<1x32xf32, #tpu.memory_space<vmem>>, %arg10: memref<1x32xf32, #tpu.memory_space<vmem>>, %arg11: memref<1x32xf32, #tpu.memory_space<vmem>>, %arg12: memref<32x128xbf16, #tpu.memory_space<vmem>>, %arg13: memref<1x128xf32, #tpu.memory_space<vmem>>, %arg14: memref<32x32xbf16, #tpu.memory_space<vmem>>, %arg15: memref<1x32xf32, #tpu.memory_space<vmem>>, %arg16: memref<1x32xf32, #tpu.memory_space<vmem>>, %arg17: memref<1x32xf32, #tpu.memory_space<vmem>>, %arg18: memref<32x128xbf16, #tpu.memory_space<vmem>>, %arg19: memref<1x128xf32, #tpu.memory_space<vmem>>, %arg20: memref<128x512xbf16, #tpu.memory_space<vmem>>, %arg21: memref<128x512xbf16, #tpu.memory_space<vmem>>, %arg22: memref<1x512xf32, #tpu.memory_space<vmem>>, %arg23: memref<512x128xbf16, #tpu.memory_space<vmem>>, %arg24: memref<1x128xf32, #tpu.memory_space<vmem>>, %arg25: memref<1x8x128xf32, #tpu.memory_space<vmem>>, %arg26: memref<16x32xf32, #tpu.memory_space<vmem>>) attributes {dimension_semantics = [#tpu.dimension_semantics<parallel>], iteration_bounds = array<i64: 2>, scalar_prefetch = 3 : i64, scratch_operands = 1 : i64, tpu.core_type = #tpu.core_type<tc>, window_params = [{transform_indices = @transform_0, window_bounds = array<i64: 1, 8, 16>}, {transform_indices = @transform_1, window_bounds = array<i64: 1, 16, 32>}, {pipeline_mode = #tpu.pipeline_mode<synchronous>, transform_indices = @transform_2, window_bounds = array<i64: 32, 32>}, {pipeline_mode = #tpu.pipeline_mode<synchronous>, transform_indices = @transform_3, window_bounds = array<i64: 32, 32>}, {pipeline_mode = #tpu.pipeline_mode<synchronous>, transform_indices = @transform_4, window_bounds = array<i64: 32, 32>}, {pipeline_mode = #tpu.pipeline_mode<synchronous>, transform_indices = @transform_5, window_bounds = array<i64: 1, 32>}, {pipeline_mode = #tpu.pipeline_mode<synchronous>, transform_indices = @transform_6, window_bounds = array<i64: 1, 32>}, {pipeline_mode = #tpu.pipeline_mode<synchronous>, transform_indices = @transform_7, window_bounds = array<i64: 1, 32>}, {pipeline_mode = #tpu.pipeline_mode<synchronous>, transform_indices = @transform_8, window_bounds = array<i64: 32, 128>}, {pipeline_mode = #tpu.pipeline_mode<synchronous>, transform_indices = @transform_9, window_bounds = array<i64: 1, 128>}, {pipeline_mode = #tpu.pipeline_mode<synchronous>, transform_indices = @transform_10, window_bounds = array<i64: 32, 32>}, {pipeline_mode = #tpu.pipeline_mode<synchronous>, transform_indices = @transform_11, window_bounds = array<i64: 1, 32>}, {pipeline_mode = #tpu.pipeline_mode<synchronous>, transform_indices = @transform_12, window_bounds = array<i64: 1, 32>}, {pipeline_mode = #tpu.pipeline_mode<synchronous>, transform_indices = @transform_13, window_bounds = array<i64: 1, 32>}, {pipeline_mode = #tpu.pipeline_mode<synchronous>, transform_indices = @transform_14, window_bounds = array<i64: 32, 128>}, {pipeline_mode = #tpu.pipeline_mode<synchronous>, transform_indices = @transform_15, window_bounds = array<i64: 1, 128>}, {pipeline_mode = #tpu.pipeline_mode<synchronous>, transform_indices = @transform_16, window_bounds = array<i64: 128, 512>}, {pipeline_mode = #tpu.pipeline_mode<synchronous>, transform_indices = @transform_17, window_bounds = array<i64: 128, 512>}, {pipeline_mode = #tpu.pipeline_mode<synchronous>, transform_indices = @transform_18, window_bounds = array<i64: 1, 512>}, {pipeline_mode = #tpu.pipeline_mode<synchronous>, transform_indices = @transform_19, window_bounds = array<i64: 512, 128>}, {pipeline_mode = #tpu.pipeline_mode<synchronous>, transform_indices = @transform_20, window_bounds = array<i64: 1, 128>}, {transform_indices = @transform_21, window_bounds = array<i64: 1, 8, 128>}]} {
    %0 = arith.index_cast %arg0 : i32 to index
    %c0 = arith.constant 0 : index
    %1 = memref.load %arg1[%0, %c0] : memref<2x8xi32, #tpu.memory_space<smem>>
    %2 = arith.index_cast %arg0 : i32 to index
    %c0_0 = arith.constant 0 : index
    %3 = memref.load %arg2[%2, %c0_0] : memref<2x8xi32, #tpu.memory_space<smem>>
    %c0_i32 = arith.constant 0 : i32
    %4 = arith.cmpi ne, %1, %c0_i32 : i32
    %c0_i32_1 = arith.constant 0 : i32
    %5 = arith.cmpi ne, %3, %c0_i32_1 : i32
    %6 = arith.ori %4, %5 : i1
    %7 = arith.extui %6 : i1 to i32
    %8 = arith.sitofp %7 : i32 to f32
    %c0_2 = arith.constant 0 : index
    %9 = arith.index_cast %1 : i32 to index
    %c0_3 = arith.constant 0 : index
    %10 = vector.load %arg5[%c0_2, %9, %c0_3] : memref<1x16x32xf32, #tpu.memory_space<vmem>>, vector<1x1x32xf32>
    %11 = vector.shape_cast %10 : vector<1x1x32xf32> to vector<1x32xf32>
    %12 = vector.broadcast %8 : f32 to vector<1x32xf32>
    %13 = arith.mulf %11, %12 : vector<1x32xf32>
    %c0_4 = arith.constant 0 : index
    %c0_5 = arith.constant 0 : index
    %14 = vector.load %arg26[%c0_4, %c0_5] : memref<16x32xf32, #tpu.memory_space<vmem>>, vector<1x32xf32>
    tpu.vector_store %arg26[%c0_4, %c0_5], %13 {strides = array<i32>} : memref<16x32xf32, #tpu.memory_space<vmem>>, vector<1x32xf32>,
    %c1_i32 = arith.constant 1 : i32
    %15 = arith.subi %3, %c1_i32 : i32
    %c0_i32_6 = arith.constant 0 : i32
    %16 = arith.maxsi %15, %c0_i32_6 : i32
    %c0_7 = arith.constant 0 : index
    %17 = arith.index_cast %16 : i32 to index
    %c0_8 = arith.constant 0 : index
    %18 = vector.load %arg5[%c0_7, %17, %c0_8] : memref<1x16x32xf32, #tpu.memory_space<vmem>>, vector<1x1x32xf32>
    %19 = vector.shape_cast %18 : vector<1x1x32xf32> to vector<1x32xf32>
    %20 = vector.broadcast %8 : f32 to vector<1x32xf32>
    %21 = arith.mulf %19, %20 : vector<1x32xf32>
    %c8 = arith.constant 8 : index
    %c0_9 = arith.constant 0 : index
    %22 = vector.load %arg26[%c8, %c0_9] : memref<16x32xf32, #tpu.memory_space<vmem>>, vector<1x32xf32>
    tpu.vector_store %arg26[%c8, %c0_9], %21 {strides = array<i32>} : memref<16x32xf32, #tpu.memory_space<vmem>>, vector<1x32xf32>,
    %23 = arith.index_cast %arg0 : i32 to index
    %c1 = arith.constant 1 : index
    %24 = memref.load %arg1[%23, %c1] : memref<2x8xi32, #tpu.memory_space<smem>>
    %25 = arith.index_cast %arg0 : i32 to index
    %c1_10 = arith.constant 1 : index
    %26 = memref.load %arg2[%25, %c1_10] : memref<2x8xi32, #tpu.memory_space<smem>>
    %c0_i32_11 = arith.constant 0 : i32
    %27 = arith.cmpi ne, %24, %c0_i32_11 : i32
    %c0_i32_12 = arith.constant 0 : i32
    %28 = arith.cmpi ne, %26, %c0_i32_12 : i32
    %29 = arith.ori %27, %28 : i1
    %30 = arith.extui %29 : i1 to i32
    %31 = arith.sitofp %30 : i32 to f32
    %c0_13 = arith.constant 0 : index
    %32 = arith.index_cast %24 : i32 to index
    %c0_14 = arith.constant 0 : index
    %33 = vector.load %arg5[%c0_13, %32, %c0_14] : memref<1x16x32xf32, #tpu.memory_space<vmem>>, vector<1x1x32xf32>
    %34 = vector.shape_cast %33 : vector<1x1x32xf32> to vector<1x32xf32>
    %35 = vector.broadcast %31 : f32 to vector<1x32xf32>
    %36 = arith.mulf %34, %35 : vector<1x32xf32>
    %c1_15 = arith.constant 1 : index
    %c0_16 = arith.constant 0 : index
    %37 = vector.load %arg26[%c1_15, %c0_16] : memref<16x32xf32, #tpu.memory_space<vmem>>, vector<1x32xf32>
    tpu.vector_store %arg26[%c1_15, %c0_16], %36 {strides = array<i32>} : memref<16x32xf32, #tpu.memory_space<vmem>>, vector<1x32xf32>,
    %c1_i32_17 = arith.constant 1 : i32
    %38 = arith.subi %26, %c1_i32_17 : i32
    %c0_i32_18 = arith.constant 0 : i32
    %39 = arith.maxsi %38, %c0_i32_18 : i32
    %c0_19 = arith.constant 0 : index
    %40 = arith.index_cast %39 : i32 to index
    %c0_20 = arith.constant 0 : index
    %41 = vector.load %arg5[%c0_19, %40, %c0_20] : memref<1x16x32xf32, #tpu.memory_space<vmem>>, vector<1x1x32xf32>
    %42 = vector.shape_cast %41 : vector<1x1x32xf32> to vector<1x32xf32>
    %43 = vector.broadcast %31 : f32 to vector<1x32xf32>
    %44 = arith.mulf %42, %43 : vector<1x32xf32>
    %c9 = arith.constant 9 : index
    %c0_21 = arith.constant 0 : index
    %45 = vector.load %arg26[%c9, %c0_21] : memref<16x32xf32, #tpu.memory_space<vmem>>, vector<1x32xf32>
    tpu.vector_store %arg26[%c9, %c0_21], %44 {strides = array<i32>} : memref<16x32xf32, #tpu.memory_space<vmem>>, vector<1x32xf32>,
    %46 = arith.index_cast %arg0 : i32 to index
    %c2 = arith.constant 2 : index
    %47 = memref.load %arg1[%46, %c2] : memref<2x8xi32, #tpu.memory_space<smem>>
    %48 = arith.index_cast %arg0 : i32 to index
    %c2_22 = arith.constant 2 : index
    %49 = memref.load %arg2[%48, %c2_22] : memref<2x8xi32, #tpu.memory_space<smem>>
    %c0_i32_23 = arith.constant 0 : i32
    %50 = arith.cmpi ne, %47, %c0_i32_23 : i32
    %c0_i32_24 = arith.constant 0 : i32
    %51 = arith.cmpi ne, %49, %c0_i32_24 : i32
    %52 = arith.ori %50, %51 : i1
    %53 = arith.extui %52 : i1 to i32
    %54 = arith.sitofp %53 : i32 to f32
    %c0_25 = arith.constant 0 : index
    %55 = arith.index_cast %47 : i32 to index
    %c0_26 = arith.constant 0 : index
    %56 = vector.load %arg5[%c0_25, %55, %c0_26] : memref<1x16x32xf32, #tpu.memory_space<vmem>>, vector<1x1x32xf32>
    %57 = vector.shape_cast %56 : vector<1x1x32xf32> to vector<1x32xf32>
    %58 = vector.broadcast %54 : f32 to vector<1x32xf32>
    %59 = arith.mulf %57, %58 : vector<1x32xf32>
    %c2_27 = arith.constant 2 : index
    %c0_28 = arith.constant 0 : index
    %60 = vector.load %arg26[%c2_27, %c0_28] : memref<16x32xf32, #tpu.memory_space<vmem>>, vector<1x32xf32>
    tpu.vector_store %arg26[%c2_27, %c0_28], %59 {strides = array<i32>} : memref<16x32xf32, #tpu.memory_space<vmem>>, vector<1x32xf32>,
    %c1_i32_29 = arith.constant 1 : i32
    %61 = arith.subi %49, %c1_i32_29 : i32
    %c0_i32_30 = arith.constant 0 : i32
    %62 = arith.maxsi %61, %c0_i32_30 : i32
    %c0_31 = arith.constant 0 : index
    %63 = arith.index_cast %62 : i32 to index
    %c0_32 = arith.constant 0 : index
    %64 = vector.load %arg5[%c0_31, %63, %c0_32] : memref<1x16x32xf32, #tpu.memory_space<vmem>>, vector<1x1x32xf32>
    %65 = vector.shape_cast %64 : vector<1x1x32xf32> to vector<1x32xf32>
    %66 = vector.broadcast %54 : f32 to vector<1x32xf32>
    %67 = arith.mulf %65, %66 : vector<1x32xf32>
    %c10 = arith.constant 10 : index
    %c0_33 = arith.constant 0 : index
    %68 = vector.load %arg26[%c10, %c0_33] : memref<16x32xf32, #tpu.memory_space<vmem>>, vector<1x32xf32>
    tpu.vector_store %arg26[%c10, %c0_33], %67 {strides = array<i32>} : memref<16x32xf32, #tpu.memory_space<vmem>>, vector<1x32xf32>,
    %69 = arith.index_cast %arg0 : i32 to index
    %c3 = arith.constant 3 : index
    %70 = memref.load %arg1[%69, %c3] : memref<2x8xi32, #tpu.memory_space<smem>>
    %71 = arith.index_cast %arg0 : i32 to index
    %c3_34 = arith.constant 3 : index
    %72 = memref.load %arg2[%71, %c3_34] : memref<2x8xi32, #tpu.memory_space<smem>>
    %c0_i32_35 = arith.constant 0 : i32
    %73 = arith.cmpi ne, %70, %c0_i32_35 : i32
    %c0_i32_36 = arith.constant 0 : i32
    %74 = arith.cmpi ne, %72, %c0_i32_36 : i32
    %75 = arith.ori %73, %74 : i1
    %76 = arith.extui %75 : i1 to i32
    %77 = arith.sitofp %76 : i32 to f32
    %c0_37 = arith.constant 0 : index
    %78 = arith.index_cast %70 : i32 to index
    %c0_38 = arith.constant 0 : index
    %79 = vector.load %arg5[%c0_37, %78, %c0_38] : memref<1x16x32xf32, #tpu.memory_space<vmem>>, vector<1x1x32xf32>
    %80 = vector.shape_cast %79 : vector<1x1x32xf32> to vector<1x32xf32>
    %81 = vector.broadcast %77 : f32 to vector<1x32xf32>
    %82 = arith.mulf %80, %81 : vector<1x32xf32>
    %c3_39 = arith.constant 3 : index
    %c0_40 = arith.constant 0 : index
    %83 = vector.load %arg26[%c3_39, %c0_40] : memref<16x32xf32, #tpu.memory_space<vmem>>, vector<1x32xf32>
    tpu.vector_store %arg26[%c3_39, %c0_40], %82 {strides = array<i32>} : memref<16x32xf32, #tpu.memory_space<vmem>>, vector<1x32xf32>,
    %c1_i32_41 = arith.constant 1 : i32
    %84 = arith.subi %72, %c1_i32_41 : i32
    %c0_i32_42 = arith.constant 0 : i32
    %85 = arith.maxsi %84, %c0_i32_42 : i32
    %c0_43 = arith.constant 0 : index
    %86 = arith.index_cast %85 : i32 to index
    %c0_44 = arith.constant 0 : index
    %87 = vector.load %arg5[%c0_43, %86, %c0_44] : memref<1x16x32xf32, #tpu.memory_space<vmem>>, vector<1x1x32xf32>
    %88 = vector.shape_cast %87 : vector<1x1x32xf32> to vector<1x32xf32>
    %89 = vector.broadcast %77 : f32 to vector<1x32xf32>
    %90 = arith.mulf %88, %89 : vector<1x32xf32>
    %c11 = arith.constant 11 : index
    %c0_45 = arith.constant 0 : index
    %91 = vector.load %arg26[%c11, %c0_45] : memref<16x32xf32, #tpu.memory_space<vmem>>, vector<1x32xf32>
    tpu.vector_store %arg26[%c11, %c0_45], %90 {strides = array<i32>} : memref<16x32xf32, #tpu.memory_space<vmem>>, vector<1x32xf32>,
    %92 = arith.index_cast %arg0 : i32 to index
    %c4 = arith.constant 4 : index
    %93 = memref.load %arg1[%92, %c4] : memref<2x8xi32, #tpu.memory_space<smem>>
    %94 = arith.index_cast %arg0 : i32 to index
    %c4_46 = arith.constant 4 : index
    %95 = memref.load %arg2[%94, %c4_46] : memref<2x8xi32, #tpu.memory_space<smem>>
    %c0_i32_47 = arith.constant 0 : i32
    %96 = arith.cmpi ne, %93, %c0_i32_47 : i32
    %c0_i32_48 = arith.constant 0 : i32
    %97 = arith.cmpi ne, %95, %c0_i32_48 : i32
    %98 = arith.ori %96, %97 : i1
    %99 = arith.extui %98 : i1 to i32
    %100 = arith.sitofp %99 : i32 to f32
    %c0_49 = arith.constant 0 : index
    %101 = arith.index_cast %93 : i32 to index
    %c0_50 = arith.constant 0 : index
    %102 = vector.load %arg5[%c0_49, %101, %c0_50] : memref<1x16x32xf32, #tpu.memory_space<vmem>>, vector<1x1x32xf32>
    %103 = vector.shape_cast %102 : vector<1x1x32xf32> to vector<1x32xf32>
    %104 = vector.broadcast %100 : f32 to vector<1x32xf32>
    %105 = arith.mulf %103, %104 : vector<1x32xf32>
    %c4_51 = arith.constant 4 : index
    %c0_52 = arith.constant 0 : index
    %106 = vector.load %arg26[%c4_51, %c0_52] : memref<16x32xf32, #tpu.memory_space<vmem>>, vector<1x32xf32>
    tpu.vector_store %arg26[%c4_51, %c0_52], %105 {strides = array<i32>} : memref<16x32xf32, #tpu.memory_space<vmem>>, vector<1x32xf32>,
    %c1_i32_53 = arith.constant 1 : i32
    %107 = arith.subi %95, %c1_i32_53 : i32
    %c0_i32_54 = arith.constant 0 : i32
    %108 = arith.maxsi %107, %c0_i32_54 : i32
    %c0_55 = arith.constant 0 : index
    %109 = arith.index_cast %108 : i32 to index
    %c0_56 = arith.constant 0 : index
    %110 = vector.load %arg5[%c0_55, %109, %c0_56] : memref<1x16x32xf32, #tpu.memory_space<vmem>>, vector<1x1x32xf32>
    %111 = vector.shape_cast %110 : vector<1x1x32xf32> to vector<1x32xf32>
    %112 = vector.broadcast %100 : f32 to vector<1x32xf32>
    %113 = arith.mulf %111, %112 : vector<1x32xf32>
    %c12 = arith.constant 12 : index
    %c0_57 = arith.constant 0 : index
    %114 = vector.load %arg26[%c12, %c0_57] : memref<16x32xf32, #tpu.memory_space<vmem>>, vector<1x32xf32>
    tpu.vector_store %arg26[%c12, %c0_57], %113 {strides = array<i32>} : memref<16x32xf32, #tpu.memory_space<vmem>>, vector<1x32xf32>,
    %115 = arith.index_cast %arg0 : i32 to index
    %c5 = arith.constant 5 : index
    %116 = memref.load %arg1[%115, %c5] : memref<2x8xi32, #tpu.memory_space<smem>>
    %117 = arith.index_cast %arg0 : i32 to index
    %c5_58 = arith.constant 5 : index
    %118 = memref.load %arg2[%117, %c5_58] : memref<2x8xi32, #tpu.memory_space<smem>>
    %c0_i32_59 = arith.constant 0 : i32
    %119 = arith.cmpi ne, %116, %c0_i32_59 : i32
    %c0_i32_60 = arith.constant 0 : i32
    %120 = arith.cmpi ne, %118, %c0_i32_60 : i32
    %121 = arith.ori %119, %120 : i1
    %122 = arith.extui %121 : i1 to i32
    %123 = arith.sitofp %122 : i32 to f32
    %c0_61 = arith.constant 0 : index
    %124 = arith.index_cast %116 : i32 to index
    %c0_62 = arith.constant 0 : index
    %125 = vector.load %arg5[%c0_61, %124, %c0_62] : memref<1x16x32xf32, #tpu.memory_space<vmem>>, vector<1x1x32xf32>
    %126 = vector.shape_cast %125 : vector<1x1x32xf32> to vector<1x32xf32>
    %127 = vector.broadcast %123 : f32 to vector<1x32xf32>
    %128 = arith.mulf %126, %127 : vector<1x32xf32>
    %c5_63 = arith.constant 5 : index
    %c0_64 = arith.constant 0 : index
    %129 = vector.load %arg26[%c5_63, %c0_64] : memref<16x32xf32, #tpu.memory_space<vmem>>, vector<1x32xf32>
    tpu.vector_store %arg26[%c5_63, %c0_64], %128 {strides = array<i32>} : memref<16x32xf32, #tpu.memory_space<vmem>>, vector<1x32xf32>,
    %c1_i32_65 = arith.constant 1 : i32
    %130 = arith.subi %118, %c1_i32_65 : i32
    %c0_i32_66 = arith.constant 0 : i32
    %131 = arith.maxsi %130, %c0_i32_66 : i32
    %c0_67 = arith.constant 0 : index
    %132 = arith.index_cast %131 : i32 to index
    %c0_68 = arith.constant 0 : index
    %133 = vector.load %arg5[%c0_67, %132, %c0_68] : memref<1x16x32xf32, #tpu.memory_space<vmem>>, vector<1x1x32xf32>
    %134 = vector.shape_cast %133 : vector<1x1x32xf32> to vector<1x32xf32>
    %135 = vector.broadcast %123 : f32 to vector<1x32xf32>
    %136 = arith.mulf %134, %135 : vector<1x32xf32>
    %c13 = arith.constant 13 : index
    %c0_69 = arith.constant 0 : index
    %137 = vector.load %arg26[%c13, %c0_69] : memref<16x32xf32, #tpu.memory_space<vmem>>, vector<1x32xf32>
    tpu.vector_store %arg26[%c13, %c0_69], %136 {strides = array<i32>} : memref<16x32xf32, #tpu.memory_space<vmem>>, vector<1x32xf32>,
    %138 = arith.index_cast %arg0 : i32 to index
    %c6 = arith.constant 6 : index
    %139 = memref.load %arg1[%138, %c6] : memref<2x8xi32, #tpu.memory_space<smem>>
    %140 = arith.index_cast %arg0 : i32 to index
    %c6_70 = arith.constant 6 : index
    %141 = memref.load %arg2[%140, %c6_70] : memref<2x8xi32, #tpu.memory_space<smem>>
    %c0_i32_71 = arith.constant 0 : i32
    %142 = arith.cmpi ne, %139, %c0_i32_71 : i32
    %c0_i32_72 = arith.constant 0 : i32
    %143 = arith.cmpi ne, %141, %c0_i32_72 : i32
    %144 = arith.ori %142, %143 : i1
    %145 = arith.extui %144 : i1 to i32
    %146 = arith.sitofp %145 : i32 to f32
    %c0_73 = arith.constant 0 : index
    %147 = arith.index_cast %139 : i32 to index
    %c0_74 = arith.constant 0 : index
    %148 = vector.load %arg5[%c0_73, %147, %c0_74] : memref<1x16x32xf32, #tpu.memory_space<vmem>>, vector<1x1x32xf32>
    %149 = vector.shape_cast %148 : vector<1x1x32xf32> to vector<1x32xf32>
    %150 = vector.broadcast %146 : f32 to vector<1x32xf32>
    %151 = arith.mulf %149, %150 : vector<1x32xf32>
    %c6_75 = arith.constant 6 : index
    %c0_76 = arith.constant 0 : index
    %152 = vector.load %arg26[%c6_75, %c0_76] : memref<16x32xf32, #tpu.memory_space<vmem>>, vector<1x32xf32>
    tpu.vector_store %arg26[%c6_75, %c0_76], %151 {strides = array<i32>} : memref<16x32xf32, #tpu.memory_space<vmem>>, vector<1x32xf32>,
    %c1_i32_77 = arith.constant 1 : i32
    %153 = arith.subi %141, %c1_i32_77 : i32
    %c0_i32_78 = arith.constant 0 : i32
    %154 = arith.maxsi %153, %c0_i32_78 : i32
    %c0_79 = arith.constant 0 : index
    %155 = arith.index_cast %154 : i32 to index
    %c0_80 = arith.constant 0 : index
    %156 = vector.load %arg5[%c0_79, %155, %c0_80] : memref<1x16x32xf32, #tpu.memory_space<vmem>>, vector<1x1x32xf32>
    %157 = vector.shape_cast %156 : vector<1x1x32xf32> to vector<1x32xf32>
    %158 = vector.broadcast %146 : f32 to vector<1x32xf32>
    %159 = arith.mulf %157, %158 : vector<1x32xf32>
    %c14 = arith.constant 14 : index
    %c0_81 = arith.constant 0 : index
    %160 = vector.load %arg26[%c14, %c0_81] : memref<16x32xf32, #tpu.memory_space<vmem>>, vector<1x32xf32>
    tpu.vector_store %arg26[%c14, %c0_81], %159 {strides = array<i32>} : memref<16x32xf32, #tpu.memory_space<vmem>>, vector<1x32xf32>,
    %161 = arith.index_cast %arg0 : i32 to index
    %c7 = arith.constant 7 : index
    %162 = memref.load %arg1[%161, %c7] : memref<2x8xi32, #tpu.memory_space<smem>>
    %163 = arith.index_cast %arg0 : i32 to index
    %c7_82 = arith.constant 7 : index
    %164 = memref.load %arg2[%163, %c7_82] : memref<2x8xi32, #tpu.memory_space<smem>>
    %c0_i32_83 = arith.constant 0 : i32
    %165 = arith.cmpi ne, %162, %c0_i32_83 : i32
    %c0_i32_84 = arith.constant 0 : i32
    %166 = arith.cmpi ne, %164, %c0_i32_84 : i32
    %167 = arith.ori %165, %166 : i1
    %168 = arith.extui %167 : i1 to i32
    %169 = arith.sitofp %168 : i32 to f32
    %c0_85 = arith.constant 0 : index
    %170 = arith.index_cast %162 : i32 to index
    %c0_86 = arith.constant 0 : index
    %171 = vector.load %arg5[%c0_85, %170, %c0_86] : memref<1x16x32xf32, #tpu.memory_space<vmem>>, vector<1x1x32xf32>
    %172 = vector.shape_cast %171 : vector<1x1x32xf32> to vector<1x32xf32>
    %173 = vector.broadcast %169 : f32 to vector<1x32xf32>
    %174 = arith.mulf %172, %173 : vector<1x32xf32>
    %c7_87 = arith.constant 7 : index
    %c0_88 = arith.constant 0 : index
    %175 = vector.load %arg26[%c7_87, %c0_88] : memref<16x32xf32, #tpu.memory_space<vmem>>, vector<1x32xf32>
    tpu.vector_store %arg26[%c7_87, %c0_88], %174 {strides = array<i32>} : memref<16x32xf32, #tpu.memory_space<vmem>>, vector<1x32xf32>,
    %c1_i32_89 = arith.constant 1 : i32
    %176 = arith.subi %164, %c1_i32_89 : i32
    %c0_i32_90 = arith.constant 0 : i32
    %177 = arith.maxsi %176, %c0_i32_90 : i32
    %c0_91 = arith.constant 0 : index
    %178 = arith.index_cast %177 : i32 to index
    %c0_92 = arith.constant 0 : index
    %179 = vector.load %arg5[%c0_91, %178, %c0_92] : memref<1x16x32xf32, #tpu.memory_space<vmem>>, vector<1x1x32xf32>
    %180 = vector.shape_cast %179 : vector<1x1x32xf32> to vector<1x32xf32>
    %181 = vector.broadcast %169 : f32 to vector<1x32xf32>
    %182 = arith.mulf %180, %181 : vector<1x32xf32>
    %c15 = arith.constant 15 : index
    %c0_93 = arith.constant 0 : index
    %183 = vector.load %arg26[%c15, %c0_93] : memref<16x32xf32, #tpu.memory_space<vmem>>, vector<1x32xf32>
    tpu.vector_store %arg26[%c15, %c0_93], %182 {strides = array<i32>} : memref<16x32xf32, #tpu.memory_space<vmem>>, vector<1x32xf32>,
    %c0_94 = arith.constant 0 : index
    %c0_95 = arith.constant 0 : index
    %184 = vector.load %arg26[%c0_94, %c0_95] : memref<16x32xf32, #tpu.memory_space<vmem>>, vector<8x32xf32>
    %c8_96 = arith.constant 8 : index
    %c0_97 = arith.constant 0 : index
    %185 = vector.load %arg26[%c8_96, %c0_97] : memref<16x32xf32, #tpu.memory_space<vmem>>, vector<8x32xf32>
    %c0_98 = arith.constant 0 : index
    %c0_99 = arith.constant 0 : index
    %c0_100 = arith.constant 0 : index
    %186 = vector.load %arg4[%c0_98, %c0_99, %c0_100] : memref<1x8x16xf32, #tpu.memory_space<vmem>>, vector<1x8x16xf32>
    %187 = vector.shape_cast %186 : vector<1x8x16xf32> to vector<8x16xf32>
    %c0_101 = arith.constant 0 : index
    %c0_102 = arith.constant 0 : index
    %c0_103 = arith.constant 0 : index
    %188 = vector.load %arg5[%c0_101, %c0_102, %c0_103] : memref<1x16x32xf32, #tpu.memory_space<vmem>>, vector<1x16x32xf32>
    %189 = vector.shape_cast %188 : vector<1x16x32xf32> to vector<16x32xf32>
    %cst = arith.constant dense<0.000000e+00> : vector<8x32xf32>
    %190 = tpu.matmul %187, %189, %cst {dimension_numbers = #tpu.dot_dimension_numbers<[1], [0], [0], [1], [0, 0, 1, 1], [], []>} : vector<8x16xf32>, vector<16x32xf32>, vector<8x32xf32> -> vector<8x32xf32>
    %191 = arith.index_cast %arg0 : i32 to index
    %192 = memref.load %arg3[%191] : memref<2xi32, #tpu.memory_space<smem>>
    %c0_104 = arith.constant 0 : index
    %193 = arith.index_cast %192 : i32 to index
    %c0_105 = arith.constant 0 : index
    %194 = vector.load %arg5[%c0_104, %193, %c0_105] : memref<1x16x32xf32, #tpu.memory_space<vmem>>, vector<1x1x32xf32>
    %195 = vector.shape_cast %194 : vector<1x1x32xf32> to vector<1x32xf32>
    %196 = arith.truncf %184 : vector<8x32xf32> to vector<8x32xbf16>
    %c0_106 = arith.constant 0 : index
    %c0_107 = arith.constant 0 : index
    %197 = vector.load %arg6[%c0_106, %c0_107] : memref<32x32xbf16, #tpu.memory_space<vmem>>, vector<32x32xbf16>
    %cst_108 = arith.constant dense<0.000000e+00> : vector<8x32xf32>
    %198 = tpu.matmul %196, %197, %cst_108 {dimension_numbers = #tpu.dot_dimension_numbers<[1], [0], [0], [1], [0, 0, 1, 1], [], []>} : vector<8x32xbf16>, vector<32x32xbf16>, vector<8x32xf32> -> vector<8x32xf32>
    %199 = arith.truncf %185 : vector<8x32xf32> to vector<8x32xbf16>
    %c0_109 = arith.constant 0 : index
    %c0_110 = arith.constant 0 : index
    %200 = vector.load %arg7[%c0_109, %c0_110] : memref<32x32xbf16, #tpu.memory_space<vmem>>, vector<32x32xbf16>
    %cst_111 = arith.constant dense<0.000000e+00> : vector<8x32xf32>
    %201 = tpu.matmul %199, %200, %cst_111 {dimension_numbers = #tpu.dot_dimension_numbers<[1], [0], [0], [1], [0, 0, 1, 1], [], []>} : vector<8x32xbf16>, vector<32x32xbf16>, vector<8x32xf32> -> vector<8x32xf32>
    %202 = arith.addf %198, %201 : vector<8x32xf32>
    %203 = arith.truncf %190 : vector<8x32xf32> to vector<8x32xbf16>
    %c0_112 = arith.constant 0 : index
    %c0_113 = arith.constant 0 : index
    %204 = vector.load %arg8[%c0_112, %c0_113] : memref<32x32xbf16, #tpu.memory_space<vmem>>, vector<32x32xbf16>
    %cst_114 = arith.constant dense<0.000000e+00> : vector<8x32xf32>
    %205 = tpu.matmul %203, %204, %cst_114 {dimension_numbers = #tpu.dot_dimension_numbers<[1], [0], [0], [1], [0, 0, 1, 1], [], []>} : vector<8x32xbf16>, vector<32x32xbf16>, vector<8x32xf32> -> vector<8x32xf32>
    %206 = arith.addf %202, %205 : vector<8x32xf32>
    %c0_115 = arith.constant 0 : index
    %c0_116 = arith.constant 0 : index
    %207 = vector.load %arg9[%c0_115, %c0_116] : memref<1x32xf32, #tpu.memory_space<vmem>>, vector<1x32xf32>
    %208 = vector.broadcast %207 : vector<1x32xf32> to vector<8x32xf32>
    %209 = arith.addf %206, %208 : vector<8x32xf32>
    %c0_117 = arith.constant 0 : index
    %c0_118 = arith.constant 0 : index
    %210 = vector.load %arg10[%c0_117, %c0_118] : memref<1x32xf32, #tpu.memory_space<vmem>>, vector<1x32xf32>
    %c0_119 = arith.constant 0 : index
    %c0_120 = arith.constant 0 : index
    %211 = vector.load %arg11[%c0_119, %c0_120] : memref<1x32xf32, #tpu.memory_space<vmem>>, vector<1x32xf32>
    %cst_121 = arith.constant dense<0.000000e+00> : vector<8xf32>
    %212 = vector.multi_reduction <add>, %209, %cst_121 [1] : vector<8x32xf32> to vector<8xf32>
    %213 = vector.shape_cast %212 : vector<8xf32> to vector<8x1xf32>
    %cst_122 = arith.constant 3.200000e+01 : f32
    %214 = vector.broadcast %cst_122 : f32 to vector<8x1xf32>
    %215 = arith.divf %213, %214 : vector<8x1xf32>
    %216 = vector.broadcast %215 : vector<8x1xf32> to vector<8x32xf32>
    %217 = arith.subf %209, %216 : vector<8x32xf32>
    %218 = arith.mulf %217, %217 : vector<8x32xf32>
    %cst_123 = arith.constant dense<0.000000e+00> : vector<8xf32>
    %219 = vector.multi_reduction <add>, %218, %cst_123 [1] : vector<8x32xf32> to vector<8xf32>
    %220 = vector.shape_cast %219 : vector<8xf32> to vector<8x1xf32>
    %cst_124 = arith.constant 3.200000e+01 : f32
    %221 = vector.broadcast %cst_124 : f32 to vector<8x1xf32>
    %222 = arith.divf %220, %221 : vector<8x1xf32>
    %223 = vector.broadcast %215 : vector<8x1xf32> to vector<8x32xf32>
    %224 = arith.subf %209, %223 : vector<8x32xf32>
    %cst_125 = arith.constant 9.99999974E-6 : f32
    %225 = vector.broadcast %cst_125 : f32 to vector<8x1xf32>
    %226 = arith.addf %222, %225 : vector<8x1xf32>
    %227 = math.rsqrt %226 : vector<8x1xf32>
    %228 = vector.broadcast %227 : vector<8x1xf32> to vector<8x32xf32>
    %229 = arith.mulf %224, %228 : vector<8x32xf32>
    %230 = vector.broadcast %210 : vector<1x32xf32> to vector<8x32xf32>
    %231 = arith.mulf %229, %230 : vector<8x32xf32>
    %232 = vector.broadcast %211 : vector<1x32xf32> to vector<8x32xf32>
    %233 = arith.addf %231, %232 : vector<8x32xf32>
    %cst_126 = arith.constant 0.000000e+00 : f32
    %234 = vector.broadcast %cst_126 : f32 to vector<8x32xf32>
    %235 = arith.cmpf oge, %233, %234 : vector<8x32xf32>
    %cst_127 = arith.constant 0.00999999977 : f32
    %236 = vector.broadcast %cst_127 : f32 to vector<8x32xf32>
    %237 = arith.mulf %236, %233 : vector<8x32xf32>
    %238 = arith.select %235, %233, %237 : vector<8x32xi1>, vector<8x32xf32>
    %239 = arith.truncf %238 : vector<8x32xf32> to vector<8x32xbf16>
    %c0_128 = arith.constant 0 : index
    %c0_129 = arith.constant 0 : index
    %240 = vector.load %arg12[%c0_128, %c0_129] : memref<32x128xbf16, #tpu.memory_space<vmem>>, vector<32x128xbf16>
    %cst_130 = arith.constant dense<0.000000e+00> : vector<8x128xf32>
    %241 = tpu.matmul %239, %240, %cst_130 {dimension_numbers = #tpu.dot_dimension_numbers<[1], [0], [0], [1], [0, 0, 1, 1], [], []>} : vector<8x32xbf16>, vector<32x128xbf16>, vector<8x128xf32> -> vector<8x128xf32>
    %c0_131 = arith.constant 0 : index
    %c0_132 = arith.constant 0 : index
    %242 = vector.load %arg13[%c0_131, %c0_132] : memref<1x128xf32, #tpu.memory_space<vmem>>, vector<1x128xf32>
    %243 = vector.broadcast %242 : vector<1x128xf32> to vector<8x128xf32>
    %244 = arith.addf %241, %243 : vector<8x128xf32>
    %245 = arith.truncf %195 : vector<1x32xf32> to vector<1x32xbf16>
    %c0_133 = arith.constant 0 : index
    %c0_134 = arith.constant 0 : index
    %246 = vector.load %arg14[%c0_133, %c0_134] : memref<32x32xbf16, #tpu.memory_space<vmem>>, vector<32x32xbf16>
    %cst_135 = arith.constant dense<0.000000e+00> : vector<1x32xf32>
    %247 = tpu.matmul %245, %246, %cst_135 {dimension_numbers = #tpu.dot_dimension_numbers<[1], [0], [0], [1], [0, 0, 1, 1], [], []>} : vector<1x32xbf16>, vector<32x32xbf16>, vector<1x32xf32> -> vector<1x32xf32>
    %c0_136 = arith.constant 0 : index
    %c0_137 = arith.constant 0 : index
    %248 = vector.load %arg15[%c0_136, %c0_137] : memref<1x32xf32, #tpu.memory_space<vmem>>, vector<1x32xf32>
    %249 = arith.addf %247, %248 : vector<1x32xf32>
    %c0_138 = arith.constant 0 : index
    %c0_139 = arith.constant 0 : index
    %250 = vector.load %arg16[%c0_138, %c0_139] : memref<1x32xf32, #tpu.memory_space<vmem>>, vector<1x32xf32>
    %c0_140 = arith.constant 0 : index
    %c0_141 = arith.constant 0 : index
    %251 = vector.load %arg17[%c0_140, %c0_141] : memref<1x32xf32, #tpu.memory_space<vmem>>, vector<1x32xf32>
    %cst_142 = arith.constant dense<0.000000e+00> : vector<1xf32>
    %252 = vector.multi_reduction <add>, %249, %cst_142 [1] : vector<1x32xf32> to vector<1xf32>
    %253 = vector.shape_cast %252 : vector<1xf32> to vector<1x1xf32>
    %cst_143 = arith.constant 3.200000e+01 : f32
    %254 = vector.broadcast %cst_143 : f32 to vector<1x1xf32>
    %255 = arith.divf %253, %254 : vector<1x1xf32>
    %256 = vector.broadcast %255 : vector<1x1xf32> to vector<1x32xf32>
    %257 = arith.subf %249, %256 : vector<1x32xf32>
    %258 = arith.mulf %257, %257 : vector<1x32xf32>
    %cst_144 = arith.constant dense<0.000000e+00> : vector<1xf32>
    %259 = vector.multi_reduction <add>, %258, %cst_144 [1] : vector<1x32xf32> to vector<1xf32>
    %260 = vector.shape_cast %259 : vector<1xf32> to vector<1x1xf32>
    %cst_145 = arith.constant 3.200000e+01 : f32
    %261 = vector.broadcast %cst_145 : f32 to vector<1x1xf32>
    %262 = arith.divf %260, %261 : vector<1x1xf32>
    %263 = vector.broadcast %255 : vector<1x1xf32> to vector<1x32xf32>
    %264 = arith.subf %249, %263 : vector<1x32xf32>
    %cst_146 = arith.constant 9.99999974E-6 : f32
    %265 = vector.broadcast %cst_146 : f32 to vector<1x1xf32>
    %266 = arith.addf %262, %265 : vector<1x1xf32>
    %267 = math.rsqrt %266 : vector<1x1xf32>
    %268 = vector.broadcast %267 : vector<1x1xf32> to vector<1x32xf32>
    %269 = arith.mulf %264, %268 : vector<1x32xf32>
    %270 = arith.mulf %269, %250 : vector<1x32xf32>
    %271 = arith.addf %270, %251 : vector<1x32xf32>
    %cst_147 = arith.constant 0.000000e+00 : f32
    %272 = vector.broadcast %cst_147 : f32 to vector<1x32xf32>
    %273 = arith.cmpf oge, %271, %272 : vector<1x32xf32>
    %cst_148 = arith.constant 0.00999999977 : f32
    %274 = vector.broadcast %cst_148 : f32 to vector<1x32xf32>
    %275 = arith.mulf %274, %271 : vector<1x32xf32>
    %276 = arith.select %273, %271, %275 : vector<1x32xi1>, vector<1x32xf32>
    %277 = arith.truncf %276 : vector<1x32xf32> to vector<1x32xbf16>
    %c0_149 = arith.constant 0 : index
    %c0_150 = arith.constant 0 : index
    %278 = vector.load %arg18[%c0_149, %c0_150] : memref<32x128xbf16, #tpu.memory_space<vmem>>, vector<32x128xbf16>
    %cst_151 = arith.constant dense<0.000000e+00> : vector<1x128xf32>
    %279 = tpu.matmul %277, %278, %cst_151 {dimension_numbers = #tpu.dot_dimension_numbers<[1], [0], [0], [1], [0, 0, 1, 1], [], []>} : vector<1x32xbf16>, vector<32x128xbf16>, vector<1x128xf32> -> vector<1x128xf32>
    %c0_152 = arith.constant 0 : index
    %c0_153 = arith.constant 0 : index
    %280 = vector.load %arg19[%c0_152, %c0_153] : memref<1x128xf32, #tpu.memory_space<vmem>>, vector<1x128xf32>
    %281 = arith.addf %279, %280 : vector<1x128xf32>
    %282 = arith.truncf %281 : vector<1x128xf32> to vector<1x128xbf16>
    %c0_154 = arith.constant 0 : index
    %c0_155 = arith.constant 0 : index
    %283 = vector.load %arg20[%c0_154, %c0_155] : memref<128x512xbf16, #tpu.memory_space<vmem>>, vector<128x512xbf16>
    %cst_156 = arith.constant dense<0.000000e+00> : vector<1x512xf32>
    %284 = tpu.matmul %282, %283, %cst_156 {dimension_numbers = #tpu.dot_dimension_numbers<[1], [0], [0], [1], [0, 0, 1, 1], [], []>} : vector<1x128xbf16>, vector<128x512xbf16>, vector<1x512xf32> -> vector<1x512xf32>
    %285 = arith.truncf %244 : vector<8x128xf32> to vector<8x128xbf16>
    %c0_157 = arith.constant 0 : index
    %c0_158 = arith.constant 0 : index
    %286 = vector.load %arg21[%c0_157, %c0_158] : memref<128x512xbf16, #tpu.memory_space<vmem>>, vector<128x512xbf16>
    %cst_159 = arith.constant dense<0.000000e+00> : vector<8x512xf32>
    %287 = tpu.matmul %285, %286, %cst_159 {dimension_numbers = #tpu.dot_dimension_numbers<[1], [0], [0], [1], [0, 0, 1, 1], [], []>} : vector<8x128xbf16>, vector<128x512xbf16>, vector<8x512xf32> -> vector<8x512xf32>
    %288 = vector.broadcast %284 : vector<1x512xf32> to vector<8x512xf32>
    %289 = arith.addf %287, %288 : vector<8x512xf32>
    %c0_160 = arith.constant 0 : index
    %c0_161 = arith.constant 0 : index
    %290 = vector.load %arg22[%c0_160, %c0_161] : memref<1x512xf32, #tpu.memory_space<vmem>>, vector<1x512xf32>
    %291 = vector.broadcast %290 : vector<1x512xf32> to vector<8x512xf32>
    %292 = arith.addf %289, %291 : vector<8x512xf32>
    %cst_162 = arith.constant 0.000000e+00 : f32
    %293 = vector.broadcast %cst_162 : f32 to vector<8x512xf32>
    %294 = arith.cmpf oge, %292, %293 : vector<8x512xf32>
    %cst_163 = arith.constant 0.00999999977 : f32
    %295 = vector.broadcast %cst_163 : f32 to vector<8x512xf32>
    %296 = arith.mulf %295, %292 : vector<8x512xf32>
    %297 = arith.select %294, %292, %296 : vector<8x512xi1>, vector<8x512xf32>
    %298 = arith.truncf %297 : vector<8x512xf32> to vector<8x512xbf16>
    %c0_164 = arith.constant 0 : index
    %c0_165 = arith.constant 0 : index
    %299 = vector.load %arg23[%c0_164, %c0_165] : memref<512x128xbf16, #tpu.memory_space<vmem>>, vector<512x128xbf16>
    %cst_166 = arith.constant dense<0.000000e+00> : vector<8x128xf32>
    %300 = tpu.matmul %298, %299, %cst_166 {dimension_numbers = #tpu.dot_dimension_numbers<[1], [0], [0], [1], [0, 0, 1, 1], [], []>} : vector<8x512xbf16>, vector<512x128xbf16>, vector<8x128xf32> -> vector<8x128xf32>
    %c0_167 = arith.constant 0 : index
    %c0_168 = arith.constant 0 : index
    %301 = vector.load %arg24[%c0_167, %c0_168] : memref<1x128xf32, #tpu.memory_space<vmem>>, vector<1x128xf32>
    %302 = vector.broadcast %301 : vector<1x128xf32> to vector<8x128xf32>
    %303 = arith.addf %300, %302 : vector<8x128xf32>
    %c0_169 = arith.constant 0 : index
    %c0_170 = arith.constant 0 : index
    %c0_171 = arith.constant 0 : index
    %304 = vector.load %arg25[%c0_169, %c0_170, %c0_171] : memref<1x8x128xf32, #tpu.memory_space<vmem>>, vector<1x8x128xf32>
    %305 = vector.shape_cast %304 : vector<1x8x128xf32> to vector<8x128xf32>
    %306 = vector.shape_cast %303 : vector<8x128xf32> to vector<1x8x128xf32>
    tpu.vector_store %arg25[%c0_169, %c0_170, %c0_171], %306 {strides = array<i32>} : memref<1x8x128xf32, #tpu.memory_space<vmem>>, vector<1x8x128xf32>,
    return
  }
  func.func @transform_0(%arg0: i32, %arg1: memref<2x8xi32, #tpu.memory_space<smem>>, %arg2: memref<2x8xi32, #tpu.memory_space<smem>>, %arg3: memref<2xi32, #tpu.memory_space<smem>>) -> (i32, i32, i32) {
    %c0_i32 = arith.constant 0 : i32
    %c0_i32_0 = arith.constant 0 : i32
    %c0_i32_1 = arith.constant 0 : i32
    return %arg0, %c0_i32, %c0_i32_0 : i32, i32, i32
  }
  func.func @transform_1(%arg0: i32, %arg1: memref<2x8xi32, #tpu.memory_space<smem>>, %arg2: memref<2x8xi32, #tpu.memory_space<smem>>, %arg3: memref<2xi32, #tpu.memory_space<smem>>) -> (i32, i32, i32) {
    %c0_i32 = arith.constant 0 : i32
    %c0_i32_0 = arith.constant 0 : i32
    %c0_i32_1 = arith.constant 0 : i32
    return %arg0, %c0_i32, %c0_i32_0 : i32, i32, i32
  }
  func.func @transform_2(%arg0: i32, %arg1: memref<2x8xi32, #tpu.memory_space<smem>>, %arg2: memref<2x8xi32, #tpu.memory_space<smem>>, %arg3: memref<2xi32, #tpu.memory_space<smem>>) -> (i32, i32) {
    %c0_i32 = arith.constant 0 : i32
    %c0_i32_0 = arith.constant 0 : i32
    %c0_i32_1 = arith.constant 0 : i32
    return %c0_i32, %c0_i32_0 : i32, i32
  }
  func.func @transform_3(%arg0: i32, %arg1: memref<2x8xi32, #tpu.memory_space<smem>>, %arg2: memref<2x8xi32, #tpu.memory_space<smem>>, %arg3: memref<2xi32, #tpu.memory_space<smem>>) -> (i32, i32) {
    %c0_i32 = arith.constant 0 : i32
    %c0_i32_0 = arith.constant 0 : i32
    %c0_i32_1 = arith.constant 0 : i32
    return %c0_i32, %c0_i32_0 : i32, i32
  }
  func.func @transform_4(%arg0: i32, %arg1: memref<2x8xi32, #tpu.memory_space<smem>>, %arg2: memref<2x8xi32, #tpu.memory_space<smem>>, %arg3: memref<2xi32, #tpu.memory_space<smem>>) -> (i32, i32) {
    %c0_i32 = arith.constant 0 : i32
    %c0_i32_0 = arith.constant 0 : i32
    %c0_i32_1 = arith.constant 0 : i32
    return %c0_i32, %c0_i32_0 : i32, i32
  }
  func.func @transform_5(%arg0: i32, %arg1: memref<2x8xi32, #tpu.memory_space<smem>>, %arg2: memref<2x8xi32, #tpu.memory_space<smem>>, %arg3: memref<2xi32, #tpu.memory_space<smem>>) -> (i32, i32) {
    %c0_i32 = arith.constant 0 : i32
    %c0_i32_0 = arith.constant 0 : i32
    %c0_i32_1 = arith.constant 0 : i32
    return %c0_i32, %c0_i32_0 : i32, i32
  }
  func.func @transform_6(%arg0: i32, %arg1: memref<2x8xi32, #tpu.memory_space<smem>>, %arg2: memref<2x8xi32, #tpu.memory_space<smem>>, %arg3: memref<2xi32, #tpu.memory_space<smem>>) -> (i32, i32) {
    %c0_i32 = arith.constant 0 : i32
    %c0_i32_0 = arith.constant 0 : i32
    %c0_i32_1 = arith.constant 0 : i32
    return %c0_i32, %c0_i32_0 : i32, i32
  }
  func.func @transform_7(%arg0: i32, %arg1: memref<2x8xi32, #tpu.memory_space<smem>>, %arg2: memref<2x8xi32, #tpu.memory_space<smem>>, %arg3: memref<2xi32, #tpu.memory_space<smem>>) -> (i32, i32) {
    %c0_i32 = arith.constant 0 : i32
    %c0_i32_0 = arith.constant 0 : i32
    %c0_i32_1 = arith.constant 0 : i32
    return %c0_i32, %c0_i32_0 : i32, i32
  }
  func.func @transform_8(%arg0: i32, %arg1: memref<2x8xi32, #tpu.memory_space<smem>>, %arg2: memref<2x8xi32, #tpu.memory_space<smem>>, %arg3: memref<2xi32, #tpu.memory_space<smem>>) -> (i32, i32) {
    %c0_i32 = arith.constant 0 : i32
    %c0_i32_0 = arith.constant 0 : i32
    %c0_i32_1 = arith.constant 0 : i32
    return %c0_i32, %c0_i32_0 : i32, i32
  }
  func.func @transform_9(%arg0: i32, %arg1: memref<2x8xi32, #tpu.memory_space<smem>>, %arg2: memref<2x8xi32, #tpu.memory_space<smem>>, %arg3: memref<2xi32, #tpu.memory_space<smem>>) -> (i32, i32) {
    %c0_i32 = arith.constant 0 : i32
    %c0_i32_0 = arith.constant 0 : i32
    %c0_i32_1 = arith.constant 0 : i32
    return %c0_i32, %c0_i32_0 : i32, i32
  }
  func.func @transform_10(%arg0: i32, %arg1: memref<2x8xi32, #tpu.memory_space<smem>>, %arg2: memref<2x8xi32, #tpu.memory_space<smem>>, %arg3: memref<2xi32, #tpu.memory_space<smem>>) -> (i32, i32) {
    %c0_i32 = arith.constant 0 : i32
    %c0_i32_0 = arith.constant 0 : i32
    %c0_i32_1 = arith.constant 0 : i32
    return %c0_i32, %c0_i32_0 : i32, i32
  }
  func.func @transform_11(%arg0: i32, %arg1: memref<2x8xi32, #tpu.memory_space<smem>>, %arg2: memref<2x8xi32, #tpu.memory_space<smem>>, %arg3: memref<2xi32, #tpu.memory_space<smem>>) -> (i32, i32) {
    %c0_i32 = arith.constant 0 : i32
    %c0_i32_0 = arith.constant 0 : i32
    %c0_i32_1 = arith.constant 0 : i32
    return %c0_i32, %c0_i32_0 : i32, i32
  }
  func.func @transform_12(%arg0: i32, %arg1: memref<2x8xi32, #tpu.memory_space<smem>>, %arg2: memref<2x8xi32, #tpu.memory_space<smem>>, %arg3: memref<2xi32, #tpu.memory_space<smem>>) -> (i32, i32) {
    %c0_i32 = arith.constant 0 : i32
    %c0_i32_0 = arith.constant 0 : i32
    %c0_i32_1 = arith.constant 0 : i32
    return %c0_i32, %c0_i32_0 : i32, i32
  }
  func.func @transform_13(%arg0: i32, %arg1: memref<2x8xi32, #tpu.memory_space<smem>>, %arg2: memref<2x8xi32, #tpu.memory_space<smem>>, %arg3: memref<2xi32, #tpu.memory_space<smem>>) -> (i32, i32) {
    %c0_i32 = arith.constant 0 : i32
    %c0_i32_0 = arith.constant 0 : i32
    %c0_i32_1 = arith.constant 0 : i32
    return %c0_i32, %c0_i32_0 : i32, i32
  }
  func.func @transform_14(%arg0: i32, %arg1: memref<2x8xi32, #tpu.memory_space<smem>>, %arg2: memref<2x8xi32, #tpu.memory_space<smem>>, %arg3: memref<2xi32, #tpu.memory_space<smem>>) -> (i32, i32) {
    %c0_i32 = arith.constant 0 : i32
    %c0_i32_0 = arith.constant 0 : i32
    %c0_i32_1 = arith.constant 0 : i32
    return %c0_i32, %c0_i32_0 : i32, i32
  }
  func.func @transform_15(%arg0: i32, %arg1: memref<2x8xi32, #tpu.memory_space<smem>>, %arg2: memref<2x8xi32, #tpu.memory_space<smem>>, %arg3: memref<2xi32, #tpu.memory_space<smem>>) -> (i32, i32) {
    %c0_i32 = arith.constant 0 : i32
    %c0_i32_0 = arith.constant 0 : i32
    %c0_i32_1 = arith.constant 0 : i32
    return %c0_i32, %c0_i32_0 : i32, i32
  }
  func.func @transform_16(%arg0: i32, %arg1: memref<2x8xi32, #tpu.memory_space<smem>>, %arg2: memref<2x8xi32, #tpu.memory_space<smem>>, %arg3: memref<2xi32, #tpu.memory_space<smem>>) -> (i32, i32) {
    %c0_i32 = arith.constant 0 : i32
    %c0_i32_0 = arith.constant 0 : i32
    %c0_i32_1 = arith.constant 0 : i32
    return %c0_i32, %c0_i32_0 : i32, i32
  }
  func.func @transform_17(%arg0: i32, %arg1: memref<2x8xi32, #tpu.memory_space<smem>>, %arg2: memref<2x8xi32, #tpu.memory_space<smem>>, %arg3: memref<2xi32, #tpu.memory_space<smem>>) -> (i32, i32) {
    %c0_i32 = arith.constant 0 : i32
    %c0_i32_0 = arith.constant 0 : i32
    %c0_i32_1 = arith.constant 0 : i32
    return %c0_i32, %c0_i32_0 : i32, i32
  }
  func.func @transform_18(%arg0: i32, %arg1: memref<2x8xi32, #tpu.memory_space<smem>>, %arg2: memref<2x8xi32, #tpu.memory_space<smem>>, %arg3: memref<2xi32, #tpu.memory_space<smem>>) -> (i32, i32) {
    %c0_i32 = arith.constant 0 : i32
    %c0_i32_0 = arith.constant 0 : i32
    %c0_i32_1 = arith.constant 0 : i32
    return %c0_i32, %c0_i32_0 : i32, i32
  }
  func.func @transform_19(%arg0: i32, %arg1: memref<2x8xi32, #tpu.memory_space<smem>>, %arg2: memref<2x8xi32, #tpu.memory_space<smem>>, %arg3: memref<2xi32, #tpu.memory_space<smem>>) -> (i32, i32) {
    %c0_i32 = arith.constant 0 : i32
    %c0_i32_0 = arith.constant 0 : i32
    %c0_i32_1 = arith.constant 0 : i32
    return %c0_i32, %c0_i32_0 : i32, i32
  }
  func.func @transform_20(%arg0: i32, %arg1: memref<2x8xi32, #tpu.memory_space<smem>>, %arg2: memref<2x8xi32, #tpu.memory_space<smem>>, %arg3: memref<2xi32, #tpu.memory_space<smem>>) -> (i32, i32) {
    %c0_i32 = arith.constant 0 : i32
    %c0_i32_0 = arith.constant 0 : i32
    %c0_i32_1 = arith.constant 0 : i32
    return %c0_i32, %c0_i32_0 : i32, i32
  }
  func.func @transform_21(%arg0: i32, %arg1: memref<2x8xi32, #tpu.memory_space<smem>>, %arg2: memref<2x8xi32, #tpu.memory_space<smem>>, %arg3: memref<2xi32, #tpu.memory_space<smem>>) -> (i32, i32, i32) {
    %c0_i32 = arith.constant 0 : i32
    %c0_i32_0 = arith.constant 0 : i32
    %c0_i32_1 = arith.constant 0 : i32
    return %arg0, %c0_i32, %c0_i32_0 : i32, i32, i32
  }
}

</mosaic_0001>

<bundles_post_ra>
// kernel: tpu_custom_call.1
= control target key start
LH: loop header
LB: loop body
LE: loop exit
PB: predicated region body
PF: predicated region fallthrough
CT: control target
= control target key end

     0   :  { %s4882_s0 = inlined_call_operand.hbm [shape: s32[2,8], index: 0, kind: input, shape index: {}]   ;;  %s4883_s3 = inlined_call_operand.hbm [shape: f32[2,8,16], index: 3, kind: input, shape index: {}]   ;;  %s4884_s4 = inlined_call_operand.hbm [shape: f32[2,16,32], index: 4, kind: input, shape index: {}]   ;;  %s4885_s5 = inlined_call_operand.vmem [shape: bf16[32,32], index: 5, kind: input, shape index: {}]   ;;  %s4886_s6 = inlined_call_operand.hbm [shape: bf16[32,32], index: 6, kind: input, shape index: {}]   ;;  %s4887_s7 = inlined_call_operand.hbm [shape: bf16[32,32], index: 7, kind: input, shape index: {}]   ;;  %s4888_s8 = inlined_call_operand.hbm [shape: f32[1,32], index: 8, kind: input, shape index: {}]   ;;  %s4889_s9 = inlined_call_operand.hbm [shape: f32[1,32], index: 9, kind: input, shape index: {}]   ;;  %s4890_s10 = inlined_call_operand.hbm [shape: f32[1,32], index: 10, kind: input, shape index: {}]   ;;  %s4891_s11 = inlined_call_operand.vmem [shape: bf16[32,128], index: 11, kind: input, shape index: {}]   ;;  %s4892_s12 = inlined_call_operand.hbm [shape: f32[1,128], index: 12, kind: input, shape index: {}]   ;;  %s4893_s13 = inlined_call_operand.vmem [shape: bf16[32,32], index: 13, kind: input, shape index: {}]   ;;  %s4894_s14 = inlined_call_operand.hbm [shape: f32[1,32], index: 14, kind: input, shape index: {}]   ;;  %s4895_s15 = inlined_call_operand.hbm [shape: f32[1,32], index: 15, kind: input, shape index: {}]   ;;  %s4896_s16 = inlined_call_operand.hbm [shape: f32[1,32], index: 16, kind: input, shape index: {}]   ;;  %s4897_s17 = inlined_call_operand.vmem [shape: bf16[32,128], index: 17, kind: input, shape index: {}]   ;;  %s4898_s18 = inlined_call_operand.hbm [shape: f32[1,128], index: 18, kind: input, shape index: {}]   ;;  %s4899_s19 = inlined_call_operand.hbm [shape: bf16[128,512], index: 19, kind: input, shape index: {}]   ;;  %s4900_s20 = inlined_call_operand.hbm [shape: bf16[128,512], index: 20, kind: input, shape index: {}]   ;;  %s4901_s21 = inlined_call_operand.vmem [shape: f32[1,512], index: 21, kind: input, shape index: {}]   ;;  %s4902_s22 = inlined_call_operand.hbm [shape: bf16[512,128], index: 22, kind: input, shape index: {}]   ;;  %s4903_s23 = inlined_call_operand.vmem [shape: f32[1,128], index: 23, kind: input, shape index: {}]   ;;  %s4904_s24 = inlined_call_operand.hbm [shape: f32[2,8,128], index: 24, kind: output, shape index: {}]   ;;  %s4905_s1 = inlined_call_operand.hbm [shape: s32[2,8], index: 1, kind: input, shape index: {}]   ;;  %s4906_s2 = inlined_call_operand.hbm [shape: s32[2], index: 2, kind: input, shape index: {}]  }
   0x1   :  { %4933 = sst [smem:[#allocation44_spill]] %s4882_s0 }
   0x2   :  { %4934 = sst [smem:[#allocation45_spill]] %s4883_s3  ;;  %s4956_s27 = sld [smem:[#allocation44_spill]] }
   0x3   :  { %4935 = sst [smem:[#allocation46_spill]] %s4884_s4 }
   0x4   :  { %4936 = sst [smem:[#allocation47_spill]] %s4885_s5 }
   0x5   :  { %4937 = sst [smem:[#allocation48_spill]] %s4886_s6 }
   0x6   :  { %4938 = sst [smem:[#allocation49_spill]] %s4887_s7 }
   0x7   :  { %4939 = sst [smem:[#allocation50_spill]] %s4888_s8 }
   0x8   :  { %4940 = sst [smem:[#allocation51_spill]] %s4889_s9 }
   0x9   :  { %4941 = sst [smem:[#allocation52_spill]] %s4890_s10 }
   0xa   :  { %4942 = sst [smem:[#allocation53_spill]] %s4891_s11 }
   0xb   :  { %4943 = sst [smem:[#allocation54_spill]] %s4892_s12 }
   0xc   :  { %4944 = sst [smem:[#allocation55_spill]] %s4893_s13 }
   0xd   :  { %4945 = sst [smem:[#allocation56_spill]] %s4894_s14 }
   0xe   :  { %4946 = sst [smem:[#allocation57_spill]] %s4895_s15 }
   0xf   :  { %4947 = sst [smem:[#allocation58_spill]] %s4896_s16 }
  0x10   :  { %4948 = sst [smem:[#allocation59_spill]] %s4897_s17  ;;  %s3404_s17 = scalar_lea.hbm %s4956_s27, 32 }
  0x11   :  { %4949 = sst [smem:[#allocation60_spill]] %s4898_s18  ;;  %p3405_p0 = scmp.ne.s32.totalorder %s4956_s27, %s3404_s17 }
  0x12   :  { %4950 = sst [smem:[#allocation61_spill]] %s4899_s19  ;;  %p3408_p1 = scmp.lt.u32.totalorder %s3404_s17, %s4956_s27 }
  0x13   :  { %4951 = sst [smem:[#allocation62_spill]] %s4900_s20 }
  0x14   :  { %4952 = sst [smem:[#allocation63_spill]] %s4901_s21  ;;  %p3410_p2 = pnand %p3408_p1, %p3405_p0 }
  0x15   :  { %4953 = sst [smem:[#allocation64_spill]] %s4902_s22 }
  0x16   :  { %4954 = sst [smem:[#allocation65_spill]] %s4903_s23 }
  0x17   :  { %4955 = sst [smem:[#allocation66_spill]] %s4904_s24 }
  0x18   :  { %3413 = shalt.err (!%p3410_p2)  }
  0x19   :  { %s3960_s0 = smov [#allocation4]   ;;  %s3414_s10 = scalar_lea.hbm %s4905_s1, 32 }
  0x1a   :  { %30 = dma.hbm_to_smem %s4956_s27, 32, %s3960_s0, [#allocation3] }
  0x1b   :  { %p3415_p3 = scmp.ne.s32.totalorder %s4905_s1, %s3414_s10  ;;  %p3418_p4 = scmp.lt.u32.totalorder %s3414_s10, %s4905_s1 }
  0x1d   :  { %p3420_p5 = pnand %p3418_p4, %p3415_p3 }
  0x1f   :  { %3423 = shalt.err (!%p3420_p5)  }
  0x20   :  { %s3961_s17 = smov [#allocation5]   ;;  %s3424_s29 = scalar_lea.hbm %s4906_s2, 16 }
  0x21   :  { %32 = dma.hbm_to_smem %s4905_s1, 32, %s3961_s17, [#allocation3] }
  0x22   :  { %p3425_p6 = scmp.ne.s32.totalorder %s4906_s2, %s3424_s29  ;;  %p3428_p7 = scmp.lt.u32.totalorder %s3424_s29, %s4906_s2 }
  0x24   :  { %p3430_p8 = pnand %p3428_p7, %p3425_p6 }
  0x26   :  { %3433 = shalt.err (!%p3430_p8)  }
  0x27   :  { %s3962_s25 = smov [#allocation6]  }
  0x28   :  { %34 = dma.hbm_to_smem %s4906_s2, 16, %s3962_s25, [#allocation3] }
  0x29   :  { %3902 = dma.done.wait [#allocation3], 80 }
  0x2a   :  { %3903 = vsyncadd [#allocation3], 4294967216 }
  0x2b   :  { %36 = sfence }
  0x2c   :  { %37 = vsyncpa [#allocation8], 0 }
  0x2d   :  { %39 = vsyncpa [#allocation8 + $0x1], 0 }
  0x2e   :  { %40 = vsyncpa [#allocation11], 0 }
  0x2f   :  { %42 = vsyncpa [#allocation11 + $0x1], 0 }
  0x30   :  { %43 = vsyncpa [#allocation14], 0 }
  0x31   :  { %44 = vsyncpa [#allocation17], 0 }
  0x32   :  { %45 = vsyncpa [#allocation20], 0 }
  0x33   :  { %46 = vsyncpa [#allocation23], 0 }
  0x34   :  { %47 = vsyncpa [#allocation26], 0 }
  0x35   :  { %48 = vsyncpa [#allocation29], 0 }
  0x36   :  { %49 = vsyncpa [#allocation9], 0 }
  0x37   :  { %51 = vsyncpa [#allocation9 + $0x1], 0  ;;  %s4150_s1 = smov 0   ;;  %s4152_s3 = smov 0  }
  0x38   :  { %s4154_s2 = smov 0   ;;  %s4156_s7 = smov 0  }
  0x39 LB: > { %s3963_s26 = smov [#allocation12]   ;;  %s4171_s28 = sadd.s32 4294967295, %s3958_s7   ;;  %s3958_s7 = sphi %s4156_s7, %s5019_s7   ;;  %s3954_s2 = sphi %s4154_s2, %s5018_s2   ;;  %s3950_s3 = sphi %s4152_s3, %s5017_s3   ;;  %s3946_s1 = sphi %s4150_s1, %s5016_s1  }
  0x3a   : > { %s554_s17 = sshll.u32 %s3963_s26, 4  ;;  %p2771_p9 = scmp.ge.s32.totalorder %s3958_s7, 1  ;;  %s4176_s17 = int_to_ptr.vmem [resolvable:$true] %s554_s17 }
  0x3b   : > { %p4923_p10 = scmp.eq.s32.totalorder %s4171_s28, 0  ;;  %p539_p11 = scmp.lt.s32.totalorder %s3958_s7, 3 }
  0x3c   : > { %s3964_s27 = smov [#allocation13]   ;;  %s3965_s0 = smov [#allocation16]  }
  0x3d   : > { %p4178_p12 = pnand %p2771_p9, %p539_p11  ;;  %s567_s4 = sshll.u32 %s3964_s27, 4  ;;  %s4191_s4 = int_to_ptr.vmem [resolvable:$true] %s567_s4 }
  0x3e   : > { %s592_s9 = sshll.u32 %s3965_s0, 4  ;;  %s4960_s25 = sld [smem:[#allocation48_spill]]  ;;  %s4193_s9 = int_to_ptr.vmem [resolvable:$true] %s592_s9 }
  0x3f   : > { %s4957_s8 = scalar_select %p4178_p12, 1, 0 }
  0x40   : > { %p3123_p0 = pneg %p4178_p12 }
  0x41   : > { %4958 = sst [smem:[#allocation43_spill]] %s4957_s8 }
  0x42   : > { %p4187_p1 = pnand %p3123_p0, %p4923_p10 }
  0x44   : > { %s3434_s10 = scalar_lea.hbm %s4960_s25, 256  ;;  %p4203_p3 = pneg %p4187_p1 }
  0x45   : > { %p3435_p2 = scmp.ne.s32.totalorder %s4960_s25, %s3434_s10  ;;  %p3441_p6 = scmp.lt.u32.totalorder %s3434_s10, %s4960_s25 }
  0x47   : > { %p3437_p4 = pnand %p4203_p3, %p3435_p2 }
  0x49   : > { %p3438_p5 = pneg %p3437_p4 }
  0x4b   : > { %p3443_p7 = pnand %p3441_p6, %p3438_p5 }
  0x4d   : > { %3446 = shalt.err (!%p3443_p7)
}
  0x4e   : > { %s3447_s30 = scalar_lea.vmem %s4176_s17, 256  ;;  %p3455_p0 = scmp.lt.s32.totalorder %s4176_s17, %s4176_s17 }
  0x4f   : > { %p3448_p8 = scmp.ne.s32.totalorder %s4176_s17, %s3447_s30  ;;  %p3456_p13 = scmp.lt.s32.totalorder %s3447_s30, %s3447_s30 }
  0x51   : > { %p3450_p9 = pnand %p3448_p8, %p4203_p3  ;;  %p3457_p2 = por %p3456_p13, %p3455_p0 }
  0x53   : > { %p3451_p11 = pneg %p3450_p9 }
  0x55   : > { %p3458_p4 = pnand %p3457_p2, %p3451_p11 }
  0x57   : > { %3461 = shalt.err (!%p3458_p4)
}
  0x58   : > { %s4921_s5 = smov 64   ;;  %s4922_s24 = smov 4  }
  0x59   : > { %3126 = dma.hbm_to_vmem [thread:$0]  (!%p4187_p1), %s4960_s25, 256, %s4176_s17, [#allocation11], %s4921_s5, %s4921_s5, %s4922_s24  }
  0x5a   : > { %s4962_s23 = sld [smem:[#allocation49_spill]] }
  0x60   : > { %s3462_s30 = scalar_lea.hbm %s4962_s23, 256 }
  0x61   : > { %p3463_p13 = scmp.ne.s32.totalorder %s4962_s23, %s3462_s30  ;;  %p3469_p7 = scmp.lt.u32.totalorder %s3462_s30, %s4962_s23 }
  0x63   : > { %p3465_p5 = pnand %p3463_p13, %p4203_p3 }
  0x65   : > { %p3466_p6 = pneg %p3465_p5 }
  0x67   : > { %p3471_p8 = pnand %p3469_p7, %p3466_p6 }
  0x69   : > { %3474 = shalt.err (!%p3471_p8)
}
  0x6a   : > { %s3475_s17 = scalar_lea.vmem %s4191_s4, 256  ;;  %p3483_p2 = scmp.lt.s32.totalorder %s4191_s4, %s4191_s4 }
  0x6b   : > { %p3476_p9 = scmp.ne.s32.totalorder %s4191_s4, %s3475_s17  ;;  %p3484_p4 = scmp.lt.s32.totalorder %s3475_s17, %s3475_s17 }
  0x6d   : > { %p3478_p11 = pnand %p3476_p9, %p4203_p3  ;;  %p3485_p13 = por %p3484_p4, %p3483_p2 }
  0x6f   : > { %p3479_p0 = pneg %p3478_p11 }
  0x71   : > { %p3486_p5 = pnand %p3485_p13, %p3479_p0 }
  0x73   : > { %3489 = shalt.err (!%p3486_p5)
}
  0x74   : > { %3129 = dma.hbm_to_vmem [thread:$0]  (!%p4187_p1), %s4962_s23, 256, %s4191_s4, [#allocation14], %s4921_s5, %s4921_s5, %s4922_s24  }
  0x75   : > { %s4963_s10 = sld [smem:[#allocation51_spill]] }
  0x7b   : > { %s3490_s6 = scalar_lea.hbm %s4963_s10, 16 }
  0x7c   : > { %p3491_p6 = scmp.ne.s32.totalorder %s4963_s10, %s3490_s6  ;;  %p3497_p9 = scmp.lt.u32.totalorder %s3490_s6, %s4963_s10 }
  0x7e   : > { %p3493_p7 = pnand %p3491_p6, %p4203_p3 }
  0x80   : > { %p3494_p8 = pneg %p3493_p7 }
  0x82   : > { %p3499_p11 = pnand %p3497_p9, %p3494_p8 }
  0x84   : > { %3502 = shalt.err (!%p3499_p11)
}
  0x85   : > { %s3503_s4 = scalar_lea.vmem %s4193_s9, 16  ;;  %s3510_s11 = scalar_lea.vmem %s4193_s9, 32 }
  0x86   : > { %p3504_p0 = scmp.ne.s32.totalorder %s4193_s9, %s3503_s4  ;;  %p3511_p13 = scmp.lt.s32.totalorder %s4193_s9, %s4193_s9 }
  0x87   : > { %p3512_p5 = scmp.lt.s32.totalorder %s3510_s11, %s3503_s4 }
  0x88   : > { %p3506_p2 = pnand %p3504_p0, %p4203_p3 }
  0x89   : > { %p3513_p6 = por %p3512_p5, %p3511_p13 }
  0x8a   : > { %p3507_p4 = pneg %p3506_p2 }
  0x8c   : > { %p3514_p7 = pnand %p3513_p6, %p3507_p4 }
  0x8e   : > { %3517 = shalt.err (!%p3514_p7)
}
  0x8f   : > { %3135 = dma.hbm_to_vmem [thread:$0]  (!%p4187_p1), %s4963_s10, 16, %s4193_s9, [#allocation17]  }
  0x90   : > { %s3968_s8 = smov [#allocation19]   ;;  %s3969_s26 = smov [#allocation22]  }
  0x91   : > { %s617_s6 = sshll.u32 %s3968_s8, 4  ;;  %s642_s0 = sshll.u32 %s3969_s26, 4  ;;  %s618_s6 = int_to_ptr.vmem [resolvable:$true] %s617_s6  ;;  %s643_s0 = int_to_ptr.vmem [resolvable:$true] %s642_s0 }
  0x92   : > { %s4964_s12 = sld [smem:[#allocation54_spill]] }
  0x98   : > { %s3518_s4 = scalar_lea.hbm %s4964_s12, 16 }
  0x99   : > { %p3519_p8 = scmp.ne.s32.totalorder %s4964_s12, %s3518_s4  ;;  %p3525_p0 = scmp.lt.u32.totalorder %s3518_s4, %s4964_s12 }
  0x9b   : > { %p3521_p9 = pnand %p3519_p8, %p4203_p3 }
  0x9d   : > { %p3522_p11 = pneg %p3521_p9 }
  0x9f   : > { %p3527_p2 = pnand %p3525_p0, %p3522_p11 }
  0xa1   : > { %3530 = shalt.err (!%p3527_p2)
}
  0xa2   : > { %s3531_s9 = scalar_lea.vmem %s618_s6, 16  ;;  %s3538_s21 = scalar_lea.vmem %s618_s6, 32 }
  0xa3   : > { %p3532_p4 = scmp.ne.s32.totalorder %s618_s6, %s3531_s9  ;;  %p3539_p6 = scmp.lt.s32.totalorder %s618_s6, %s618_s6 }
  0xa4   : > { %p3540_p7 = scmp.lt.s32.totalorder %s3538_s21, %s3531_s9 }
  0xa5   : > { %p3534_p13 = pnand %p3532_p4, %p4203_p3 }
  0xa6   : > { %p3541_p10 = por %p3540_p7, %p3539_p6 }
  0xa7   : > { %p3535_p5 = pneg %p3534_p13 }
  0xa9   : > { %p3542_p12 = pnand %p3541_p10, %p3535_p5 }
  0xab   : > { %3545 = shalt.err (!%p3542_p12)
}
  0xac   : > { %3141 = dma.hbm_to_vmem [thread:$0]  (!%p4187_p1), %s4964_s12, 16, %s618_s6, [#allocation20]  }
  0xad   : > { %s4965_s15 = sld [smem:[#allocation57_spill]] }
  0xb3   : > { %s3546_s30 = scalar_lea.hbm %s4965_s15, 16 }
  0xb4   : > { %p3547_p8 = scmp.ne.s32.totalorder %s4965_s15, %s3546_s30  ;;  %p3553_p12 = scmp.lt.u32.totalorder %s3546_s30, %s4965_s15 }
  0xb6   : > { %p3549_p9 = pnand %p3547_p8, %p4203_p3 }
  0xb8   : > { %p3550_p10 = pneg %p3549_p9 }
  0xba   : > { %p3555_p11 = pnand %p3553_p12, %p3550_p10 }
  0xbc   : > { %3558 = shalt.err (!%p3555_p11)
}
  0xbd   : > { %s3559_s9 = scalar_lea.vmem %s643_s0, 16  ;;  %s3566_s6 = scalar_lea.vmem %s643_s0, 32 }
  0xbe   : > { %p3560_p0 = scmp.ne.s32.totalorder %s643_s0, %s3559_s9  ;;  %p3567_p13 = scmp.lt.s32.totalorder %s643_s0, %s643_s0 }
  0xbf   : > { %p3568_p5 = scmp.lt.s32.totalorder %s3566_s6, %s3559_s9 }
  0xc0   : > { %p3562_p2 = pnand %p3560_p0, %p4203_p3 }
  0xc1   : > { %p3569_p6 = por %p3568_p5, %p3567_p13 }
  0xc2   : > { %p3563_p4 = pneg %p3562_p2 }
  0xc4   : > { %p3570_p7 = pnand %p3569_p6, %p3563_p4 }
  0xc6   : > { %3573 = shalt.err (!%p3570_p7)
}
  0xc7   : > { %3147 = dma.hbm_to_vmem [thread:$0]  (!%p4187_p1), %s4965_s15, 16, %s643_s0, [#allocation23]  }
  0xc8   : > { %s3970_s8 = smov [#allocation25]   ;;  %s4966_s18 = sld [smem:[#allocation60_spill]] }
  0xc9   : > { %s667_s24 = sshll.u32 %s3970_s8, 4  ;;  %s668_s24 = int_to_ptr.vmem [resolvable:$true] %s667_s24 }
  0xce   : > { %s3574_s17 = scalar_lea.hbm %s4966_s18, 16 }
  0xcf   : > { %p3575_p8 = scmp.ne.s32.totalorder %s4966_s18, %s3574_s17  ;;  %p3581_p12 = scmp.lt.u32.totalorder %s3574_s17, %s4966_s18 }
  0xd1   : > { %p3577_p9 = pnand %p3575_p8, %p4203_p3 }
  0xd3   : > { %p3578_p10 = pneg %p3577_p9 }
  0xd5   : > { %p3583_p11 = pnand %p3581_p12, %p3578_p10 }
  0xd7   : > { %3586 = shalt.err (!%p3583_p11)
}
  0xd8   : > { %s3587_s0 = scalar_lea.vmem %s668_s24, 16  ;;  %s3594_s6 = scalar_lea.vmem %s668_s24, 32 }
  0xd9   : > { %p3588_p0 = scmp.ne.s32.totalorder %s668_s24, %s3587_s0  ;;  %p3595_p13 = scmp.lt.s32.totalorder %s668_s24, %s668_s24 }
  0xda   : > { %p3596_p5 = scmp.lt.s32.totalorder %s3594_s6, %s3587_s0 }
  0xdb   : > { %p3590_p2 = pnand %p3588_p0, %p4203_p3 }
  0xdc   : > { %p3597_p6 = por %p3596_p5, %p3595_p13 }
  0xdd   : > { %p3591_p4 = pneg %p3590_p2 }
  0xdf   : > { %p3598_p7 = pnand %p3597_p6, %p3591_p4 }
  0xe1   : > { %3601 = shalt.err (!%p3598_p7)
}
  0xe2   : > { %3153 = dma.hbm_to_vmem [thread:$0]  (!%p4187_p1), %s4966_s18, 16, %s668_s24, [#allocation26]  }
  0xe3   : > { %s3971_s8 = smov [#allocation28]   ;;  %s3972_s30 = smov [#allocation15]  }
  0xe4   : > { %s690_s26 = sshll.u32 %s3971_s8, 4  ;;  %s581_s17 = sshll.u32 %s3972_s30, 4  ;;  %s691_s26 = int_to_ptr.vmem [resolvable:$true] %s690_s26  ;;  %s4331_s17 = int_to_ptr.vmem [resolvable:$true] %s581_s17 }
  0xe5   : > { %s4967_s20 = sld [smem:[#allocation62_spill]] }
  0xeb   : > { %s3602_s13 = scalar_lea.hbm %s4967_s20, 4096 }
  0xec   : > { %p3603_p8 = scmp.ne.s32.totalorder %s4967_s20, %s3602_s13  ;;  %p3609_p12 = scmp.lt.u32.totalorder %s3602_s13, %s4967_s20 }
  0xee   : > { %p3605_p9 = pnand %p3603_p8, %p4203_p3 }
  0xf0   : > { %p3606_p10 = pneg %p3605_p9 }
  0xf2   : > { %p3611_p11 = pnand %p3609_p12, %p3606_p10 }
  0xf4   : > { %3614 = shalt.err (!%p3611_p11)
}
  0xf5   : > { %s3615_s21 = scalar_lea.vmem %s691_s26, 4096  ;;  %p3623_p13 = scmp.lt.s32.totalorder %s691_s26, %s691_s26 }
  0xf6   : > { %p3616_p0 = scmp.ne.s32.totalorder %s691_s26, %s3615_s21  ;;  %p3624_p5 = scmp.lt.s32.totalorder %s3615_s21, %s3615_s21 }
  0xf8   : > { %p3618_p2 = pnand %p3616_p0, %p4203_p3  ;;  %p3625_p6 = por %p3624_p5, %p3623_p13 }
  0xfa   : > { %p3619_p4 = pneg %p3618_p2 }
  0xfc   : > { %p3626_p7 = pnand %p3625_p6, %p3619_p4 }
  0xfe   : > { %3629 = shalt.err (!%p3626_p7)
}
  0xff   : > { %s4926_s5 = smov 256   ;;  %s4927_s8 = smov 16  }
 0x100   : > { %3159 = dma.hbm_to_vmem [thread:$0]  (!%p4187_p1), %s4967_s20, 4096, %s691_s26, [#allocation29], %s4926_s5, %s4926_s5, %s4927_s8  }
 0x101   : > { %s4968_s9 = sld [smem:[#allocation50_spill]] }
 0x107   : > { %s3630_s0 = scalar_lea.hbm %s4968_s9, 16 }
 0x108   : > { %p3631_p8 = scmp.ne.s32.totalorder %s4968_s9, %s3630_s0  ;;  %p3637_p12 = scmp.lt.u32.totalorder %s3630_s0, %s4968_s9 }
 0x10a   : > { %p3633_p9 = pnand %p3631_p8, %p4203_p3 }
 0x10c   : > { %p3634_p10 = pneg %p3633_p9 }
 0x10e   : > { %p3639_p11 = pnand %p3637_p12, %p3634_p10 }
 0x110   : > { %3642 = shalt.err (!%p3639_p11)
}
 0x111   : > { %s3643_s26 = scalar_lea.vmem %s4331_s17, 16  ;;  %s3650_s30 = scalar_lea.vmem %s4331_s17, 32 }
 0x112   : > { %p3644_p0 = scmp.ne.s32.totalorder %s4331_s17, %s3643_s26  ;;  %p3651_p13 = scmp.lt.s32.totalorder %s4331_s17, %s4331_s17 }
 0x113   : > { %p3652_p5 = scmp.lt.s32.totalorder %s3650_s30, %s3643_s26 }
 0x114   : > { %p3646_p2 = pnand %p3644_p0, %p4203_p3 }
 0x115   : > { %p3653_p6 = por %p3652_p5, %p3651_p13 }
 0x116   : > { %p3647_p4 = pneg %p3646_p2 }
 0x118   : > { %p3654_p7 = pnand %p3653_p6, %p3647_p4 }
 0x11a   : > { %3657 = shalt.err (!%p3654_p7)
}
 0x11b   : > { %3132 = dma.hbm_to_vmem [thread:$0]  (!%p4187_p1), %s4968_s9, 16, %s4331_s17, [#allocation14]  }
 0x11c   : > { %s3975_s11 = smov [#allocation18]   ;;  %s3976_s0 = smov [#allocation21]  }
 0x11d   : > { %s603_s13 = sshll.u32 %s3975_s11, 4  ;;  %s631_s6 = sshll.u32 %s3976_s0, 4  ;;  %s604_s13 = int_to_ptr.vmem [resolvable:$true] %s603_s13  ;;  %s4378_s6 = int_to_ptr.vmem [resolvable:$true] %s631_s6 }
 0x11e   : > { %s4969_s26 = sld [smem:[#allocation52_spill]] }
 0x124   : > { %s3658_s30 = scalar_lea.hbm %s4969_s26, 16 }
 0x125   : > { %p3659_p8 = scmp.ne.s32.totalorder %s4969_s26, %s3658_s30  ;;  %p3665_p12 = scmp.lt.u32.totalorder %s3658_s30, %s4969_s26 }
 0x127   : > { %p3661_p9 = pnand %p3659_p8, %p4203_p3 }
 0x129   : > { %p3662_p10 = pneg %p3661_p9 }
 0x12b   : > { %p3667_p11 = pnand %p3665_p12, %p3662_p10 }
 0x12d   : > { %3670 = shalt.err (!%p3667_p11)
}
 0x12e   : > { %s3671_s4 = scalar_lea.vmem %s604_s13, 16  ;;  %s3678_s11 = scalar_lea.vmem %s604_s13, 32 }
 0x12f   : > { %p3672_p0 = scmp.ne.s32.totalorder %s604_s13, %s3671_s4  ;;  %p3679_p13 = scmp.lt.s32.totalorder %s604_s13, %s604_s13 }
 0x130   : > { %p3680_p5 = scmp.lt.s32.totalorder %s3678_s11, %s3671_s4 }
 0x131   : > { %p3674_p2 = pnand %p3672_p0, %p4203_p3 }
 0x132   : > { %p3681_p6 = por %p3680_p5, %p3679_p13 }
 0x133   : > { %p3675_p4 = pneg %p3674_p2 }
 0x135   : > { %p3682_p7 = pnand %p3681_p6, %p3675_p4 }
 0x137   : > { %3685 = shalt.err (!%p3682_p7)
}
 0x138   : > { %3138 = dma.hbm_to_vmem [thread:$0]  (!%p4187_p1), %s4969_s26, 16, %s604_s13, [#allocation17]  }
 0x139   : > { %s4970_s14 = sld [smem:[#allocation56_spill]] }
 0x13f   : > { %s3686_s21 = scalar_lea.hbm %s4970_s14, 16 }
 0x140   : > { %p3687_p8 = scmp.ne.s32.totalorder %s4970_s14, %s3686_s21  ;;  %p3693_p12 = scmp.lt.u32.totalorder %s3686_s21, %s4970_s14 }
 0x142   : > { %p3689_p9 = pnand %p3687_p8, %p4203_p3 }
 0x144   : > { %p3690_p10 = pneg %p3689_p9 }
 0x146   : > { %p3695_p11 = pnand %p3693_p12, %p3690_p10 }
 0x148   : > { %3698 = shalt.err (!%p3695_p11)
}
 0x149   : > { %s3699_s13 = scalar_lea.vmem %s4378_s6, 16  ;;  %s3706_s11 = scalar_lea.vmem %s4378_s6, 32 }
 0x14a   : > { %p3700_p0 = scmp.ne.s32.totalorder %s4378_s6, %s3699_s13  ;;  %p3707_p13 = scmp.lt.s32.totalorder %s4378_s6, %s4378_s6 }
 0x14b   : > { %p3708_p5 = scmp.lt.s32.totalorder %s3706_s11, %s3699_s13 }
 0x14c   : > { %p3702_p2 = pnand %p3700_p0, %p4203_p3 }
 0x14d   : > { %p3709_p6 = por %p3708_p5, %p3707_p13 }
 0x14e   : > { %p3703_p4 = pneg %p3702_p2 }
 0x150   : > { %p3710_p7 = pnand %p3709_p6, %p3703_p4 }
 0x152   : > { %3713 = shalt.err (!%p3710_p7)
}
 0x153   : > { %3144 = dma.hbm_to_vmem [thread:$0]  (!%p4187_p1), %s4970_s14, 16, %s4378_s6, [#allocation20]  }
 0x154   : > { %s3977_s0 = smov [#allocation24]   ;;  %s3978_s21 = smov [#allocation27]  }
 0x155   : > { %s653_s24 = sshll.u32 %s3977_s0, 4  ;;  %s677_s30 = sshll.u32 %s3978_s21, 4  ;;  %s654_s24 = int_to_ptr.vmem [resolvable:$true] %s653_s24  ;;  %s4422_s30 = int_to_ptr.vmem [resolvable:$true] %s677_s30 }
 0x156   : > { %s4971_s16 = sld [smem:[#allocation58_spill]] }
 0x15c   : > { %s3714_s4 = scalar_lea.hbm %s4971_s16, 16 }
 0x15d   : > { %p3715_p8 = scmp.ne.s32.totalorder %s4971_s16, %s3714_s4  ;;  %p3721_p12 = scmp.lt.u32.totalorder %s3714_s4, %s4971_s16 }
 0x15f   : > { %p3717_p9 = pnand %p3715_p8, %p4203_p3 }
 0x161   : > { %p3718_p10 = pneg %p3717_p9 }
 0x163   : > { %p3723_p11 = pnand %p3721_p12, %p3718_p10 }
 0x165   : > { %3726 = shalt.err (!%p3723_p11)
}
 0x166   : > { %s3727_s8 = scalar_lea.vmem %s654_s24, 16  ;;  %s3734_s0 = scalar_lea.vmem %s654_s24, 32 }
 0x167   : > { %p3728_p0 = scmp.ne.s32.totalorder %s654_s24, %s3727_s8  ;;  %p3735_p13 = scmp.lt.s32.totalorder %s654_s24, %s654_s24 }
 0x168   : > { %p3736_p5 = scmp.lt.s32.totalorder %s3734_s0, %s3727_s8 }
 0x169   : > { %p3730_p2 = pnand %p3728_p0, %p4203_p3 }
 0x16a   : > { %p3737_p6 = por %p3736_p5, %p3735_p13 }
 0x16b   : > { %p3731_p4 = pneg %p3730_p2 }
 0x16d   : > { %p3738_p7 = pnand %p3737_p6, %p3731_p4 }
 0x16f   : > { %3741 = shalt.err (!%p3738_p7)
}
 0x170   : > { %3150 = dma.hbm_to_vmem [thread:$0]  (!%p4187_p1), %s4971_s16, 16, %s654_s24, [#allocation23]  }
 0x171   : > { %s4972_s19 = sld [smem:[#allocation61_spill]] }
 0x177   : > { %s3742_s13 = scalar_lea.hbm %s4972_s19, 4096 }
 0x178   : > { %p3743_p8 = scmp.ne.s32.totalorder %s4972_s19, %s3742_s13  ;;  %p3749_p12 = scmp.lt.u32.totalorder %s3742_s13, %s4972_s19 }
 0x17a   : > { %p3745_p9 = pnand %p3743_p8, %p4203_p3 }
 0x17c   : > { %p3746_p10 = pneg %p3745_p9 }
 0x17e   : > { %p3751_p11 = pnand %p3749_p12, %p3746_p10 }
 0x180   : > { %3754 = shalt.err (!%p3751_p11)
}
 0x181   : > { %s3755_s24 = scalar_lea.vmem %s4422_s30, 4096  ;;  %p3763_p13 = scmp.lt.s32.totalorder %s4422_s30, %s4422_s30 }
 0x182   : > { %p3756_p0 = scmp.ne.s32.totalorder %s4422_s30, %s3755_s24  ;;  %p3764_p5 = scmp.lt.s32.totalorder %s3755_s24, %s3755_s24 }
 0x184   : > { %p3758_p2 = pnand %p3756_p0, %p4203_p3  ;;  %p3765_p6 = por %p3764_p5, %p3763_p13 }
 0x186   : > { %p3759_p4 = pneg %p3758_p2 }
 0x188   : > { %p3766_p7 = pnand %p3765_p6, %p3759_p4 }
 0x18a   : > { %3769 = shalt.err (!%p3766_p7)
}
 0x18b   : > { %s4973_s0 = smov 16   ;;  %s4974_s21 = smov 256  }
 0x18c   : > { %3156 = dma.hbm_to_vmem [thread:$0]  (!%p4187_p1), %s4972_s19, 4096, %s4422_s30, [#allocation26], %s4974_s21, %s4974_s21, %s4973_s0  }
 0x18d   : > { %s3979_s4 = smov [#allocation30]   ;;  %s4975_s22 = sld [smem:[#allocation64_spill]] }
 0x18e   : > { %s706_s13 = sshll.u32 %s3979_s4, 4  ;;  %s707_s13 = int_to_ptr.vmem [resolvable:$true] %s706_s13 }
 0x193   : > { %s3770_s6 = scalar_lea.hbm %s4975_s22, 4096 }
 0x194   : > { %p3771_p8 = scmp.ne.s32.totalorder %s4975_s22, %s3770_s6  ;;  %p3777_p12 = scmp.lt.u32.totalorder %s3770_s6, %s4975_s22 }
 0x196   : > { %p3773_p9 = pnand %p3771_p8, %p4203_p3 }
 0x198   : > { %p3774_p10 = pneg %p3773_p9 }
 0x19a   : > { %p3779_p11 = pnand %p3777_p12, %p3774_p10 }
 0x19c   : > { %3782 = shalt.err (!%p3779_p11)
}
 0x19d   : > { %s3783_s30 = scalar_lea.vmem %s707_s13, 4096  ;;  %p3791_p13 = scmp.lt.s32.totalorder %s707_s13, %s707_s13 }
 0x19e   : > { %p3784_p0 = scmp.ne.s32.totalorder %s707_s13, %s3783_s30  ;;  %p3792_p5 = scmp.lt.s32.totalorder %s3783_s30, %s3783_s30 }
 0x1a0   : > { %p3786_p2 = pnand %p3784_p0, %p4203_p3  ;;  %p3793_p6 = por %p3792_p5, %p3791_p13 }
 0x1a2   : > { %p3787_p4 = pneg %p3786_p2 }
 0x1a4   : > { %p3794_p7 = pnand %p3793_p6, %p3787_p4 }
 0x1a6   : > { %3797 = shalt.err (!%p3794_p7)
}
 0x1a7   : > { %s4976_s0 = smov 4   ;;  %s4977_s21 = smov 64  }
 0x1a8   : > { %3162 = dma.hbm_to_vmem [thread:$0]  (!%p4187_p1), %s4975_s22, 4096, %s707_s13, [#allocation29], %s4977_s21, %s4977_s21, %s4976_s0  }
 0x1a9   : > { %s2770_s29 = sadd.s32 4294967294, %s3958_s7   ;;  %s4491_s27 = sadd.s32 1, %s3958_s7  }
 0x1aa   : > { %s64_s10 = sadd.s32 1, %s3954_s2  ;;  %s61_s17 = ssub.s32 %s3958_s7, %s4491_s27 }
 0x1ab   : > { %p71_p3 = scmp.ne.s32.totalorder %s3954_s2, %s3950_s3  ;;  %p62_p8 = scmp.eq.s32.totalorder %s61_s17, 0 }
 0x1ac   : > { %p72_p9 = scmp.eq.s32.totalorder %s3958_s7, 0  ;;  %p77_p10 = scmp.ne.s32.totalorder %s3950_s3, %s3946_s1 }
 0x1ad   : > { %p526_p12 = scmp.eq.s32.totalorder %s4171_s28, 1  ;;  %p4978_p0 = scmp.eq.s32.totalorder %s4171_s28, 0 }
 0x1ae   : > { %s4503_s4 = scalar_select %p62_p8, %s3954_s2, %s64_s10  }
 0x1af   : > { %p73_p11 = por %p72_p9, %p71_p3  ;;  %p4507_p2 = por %p4978_p0, %p77_p10 }
 0x1b0   : > { %p4511_p1 = por %p526_p12, %p71_p3  ;;  %p532_p4 = scmp.eq.s32.totalorder %s2770_s29, 1 }
 0x1b1   : > { %p3187_p13 = scmp.lt.s32.totalorder %s3958_s7, 2  ;;  %s4517_s5 = sand.u32 1, %s3954_s2  }
 0x1b2   : > { %s4980_s13 = scalar_select %p4511_p1, 1, 0 }
 0x1b3   : > { %p4519_p5 = por %p532_p4, %p77_p10  ;;  %s2786_s8 = sshll.u32 %s4517_s5, 3 }
 0x1b4   : > { %s2787_s24 = sshll.u32 %s3958_s7, 7  ;;  %s4982_s21 = sld [smem:[#allocation45_spill]] }
 0x1b5   : > { %s4981_s6 = scalar_select %p4519_p5, 1, 0 }
 0x1b6   : > { %s727_s9 = scalar_lea.vmem [#allocation7], %s2786_s8  ;;  %p4530_p6 = pnand %p3187_p13, %p73_p11 }
 0x1b7   : > { %s734_s29 = sshll.u32 %s727_s9, 4  ;;  %s724_s14 = scalar_lea.sflag [#allocation8], %s4517_s5  ;;  %s4534_s29 = int_to_ptr.vmem [resolvable:$true] %s734_s29 }
 0x1b8   : > { %p3800_p3 = pneg %p4530_p6 }
 0x1ba   : > { %s4528_s12 = scalar_lea.hbm %s4982_s21, %s2787_s24  ;;  %s3803_s30 = scalar_lea.hbm %s4982_s21, 256 }
 0x1bb   : > { %s3798_s15 = scalar_lea.hbm %s4528_s12, 128  ;;  %p3804_p10 = scmp.lt.u32.totalorder %s4528_s12, %s4982_s21 }
 0x1bc   : > { %p3799_p7 = scmp.ne.s32.totalorder %s4528_s12, %s3798_s15  ;;  %p3805_p12 = scmp.lt.u32.totalorder %s3803_s30, %s3798_s15 }
 0x1bd   : > { %p3807_p0 = scmp.lt.u32.totalorder %s3798_s15, %s4528_s12 }
 0x1be   : > { %p3801_p8 = pnand %p3800_p3, %p3799_p7  ;;  %p3806_p11 = por %p3805_p12, %p3804_p10 }
 0x1c0   : > { %p3802_p9 = pneg %p3801_p8  ;;  %p3808_p4 = por %p3807_p0, %p3806_p11 }
 0x1c2   : > { %p3809_p13 = pnand %p3808_p4, %p3802_p9 }
 0x1c4   : > { %3812 = shalt.err (!%p3809_p13)
}
 0x1c5   : > { %s3813_s17 = scalar_lea.vmem %s4534_s29, 128  ;;  %s3980_s8 = smov [#allocation7]  }
 0x1c6   : > { %p3814_p7 = scmp.ne.s32.totalorder %s4534_s29, %s3813_s17  ;;  %s3818_s24 = sshll.u32 %s3980_s8, 4  ;;  %s3819_s24 = int_to_ptr.vmem [resolvable:$false] %s3818_s24 }
 0x1c7   : > { %s3820_s0 = scalar_lea.vmem %s3819_s24, 256  ;;  %p3821_p1 = scmp.lt.s32.totalorder %s4534_s29, %s3819_s24 }
 0x1c8   : > { %p3816_p8 = pnand %p3814_p7, %p3800_p3  ;;  %p3822_p10 = scmp.lt.s32.totalorder %s3820_s0, %s3813_s17 }
 0x1ca   : > { %p3817_p5 = pneg %p3816_p8  ;;  %p3823_p12 = por %p3822_p10, %p3821_p1 }
 0x1cc   : > { %p3824_p11 = pnand %p3823_p12, %p3817_p5 }
 0x1ce   : > { %3827 = shalt.err (!%p3824_p11)
}
 0x1cf   : > { %3166 = dma.hbm_to_vmem [thread:$0]  (!%p4530_p6), %s4528_s12, 128, %s4534_s29, %s724_s14  }
 0x1d0   : > { %s4984_s15 = sshll.u32 %s4517_s5, 4  ;;  %s741_s8 = sand.u32 1, %s3958_s7  }
 0x1d1   : > { %s745_s30 = scalar_lea.vmem [#allocation10], %s4984_s15  ;;  %s2941_s24 = sshll.u32 %s3958_s7, 8 }
 0x1d2   : > { %s752_s9 = sshll.u32 %s745_s30, 4  ;;  %s4985_s16 = sld [smem:[#allocation46_spill]]  ;;  %s4566_s9 = int_to_ptr.vmem [resolvable:$true] %s752_s9 }
 0x1d3   : > { %s4574_s19 = scalar_lea.sflag [#allocation11], %s741_s8 }
 0x1d8   : > { %s4572_s18 = scalar_lea.hbm %s4985_s16, %s2941_s24  ;;  %s3833_s12 = scalar_lea.hbm %s4985_s16, 512 }
 0x1d9   : > { %s3828_s20 = scalar_lea.hbm %s4572_s18, 256  ;;  %p3834_p0 = scmp.lt.u32.totalorder %s4572_s18, %s4985_s16 }
 0x1da   : > { %p3829_p1 = scmp.ne.s32.totalorder %s4572_s18, %s3828_s20  ;;  %p3835_p4 = scmp.lt.u32.totalorder %s3833_s12, %s3828_s20 }
 0x1db   : > { %p3837_p7 = scmp.lt.u32.totalorder %s3828_s20, %s4572_s18 }
 0x1dc   : > { %p3831_p5 = pnand %p3829_p1, %p3800_p3  ;;  %p3836_p13 = por %p3835_p4, %p3834_p0 }
 0x1de   : > { %p3832_p9 = pneg %p3831_p5  ;;  %p3838_p8 = por %p3837_p7, %p3836_p13 }
 0x1e0   : > { %p3839_p10 = pnand %p3838_p8, %p3832_p9 }
 0x1e2   : > { %3842 = shalt.err (!%p3839_p10)
}
 0x1e3   : > { %s3843_s30 = scalar_lea.vmem %s4566_s9, 256  ;;  %s3981_s8 = smov [#allocation10]  }
 0x1e4   : > { %p3844_p12 = scmp.ne.s32.totalorder %s4566_s9, %s3843_s30  ;;  %s3848_s24 = sshll.u32 %s3981_s8, 4  ;;  %s3849_s24 = int_to_ptr.vmem [resolvable:$false] %s3848_s24 }
 0x1e5   : > { %s3850_s17 = scalar_lea.vmem %s3849_s24, 512  ;;  %p3851_p5 = scmp.lt.s32.totalorder %s4566_s9, %s3849_s24 }
 0x1e6   : > { %p3846_p11 = pnand %p3844_p12, %p3800_p3  ;;  %p3852_p0 = scmp.lt.s32.totalorder %s3850_s17, %s3843_s30 }
 0x1e8   : > { %p3847_p1 = pneg %p3846_p11  ;;  %p3853_p4 = por %p3852_p0, %p3851_p5 }
 0x1ea   : > { %p3854_p13 = pnand %p3853_p4, %p3847_p1 }
 0x1ec   : > { %3857 = shalt.err (!%p3854_p13)
}
 0x1ed   : > { %s3982_s20 = smov 128   ;;  %s3983_s0 = smov 8  }
 0x1ee   : > { %3169 = dma.hbm_to_vmem [thread:$0]  (!%p4530_p6), %s4572_s18, 256, %s4566_s9, %s4574_s19, %s3982_s20, %s3982_s20, %s3983_s0  }
 0x1ef   : > { %s4986_s14 = sld [smem:[#allocation43_spill]] }
 0x1f5   : > { %p4987_p3 = scmp.ne.s32.totalorder %s4986_s14, 0 }
 0x1f6   : > { %s4603_s5 = sand.u32 (!%p4987_p3), 1, %s3950_s3  }
 0x1f7   : > { %764 = sbr.rel (%p4987_p3) target bundleno = 2001 (0x7d1), region = 104  ;;  %s4930_s12 = sshll.u32 (!%p4987_p3), %s4603_s5, 3 }
 0x1f8   : > { %s767_s29 = scalar_lea.sflag (!%p4987_p3), [#allocation8], %s4603_s5  ;;  %s4609_s15 = scalar_lea.vmem (!%p4987_p3), [#allocation7], %s4930_s12 }
 0x1fe   : > { %3905 = dma.done.wait (%p4507_p2), %s767_s29, 128  }
 0x1ff   : > { %3907 = vsyncadd (%p4507_p2), %s767_s29, 4294967168  ;;  %s775_s18 = sand.u32 1, %s4171_s28   ;;  %s2793_s19 = sshll.u32 %s4603_s5, 4 }
 0x200   : > { %s776_s10 = scalar_lea.sflag [#allocation11], %s775_s18  ;;  %s4617_s9 = scalar_lea.vmem [#allocation10], %s2793_s19 }
 0x201   : > { %3909 = dma.done.wait (%p4507_p2), %s776_s10, 256  }
 0x202   : > { %3911 = vsyncadd (%p4507_p2), %s776_s10, 4294967040  ;;  %p4988_p6 = scmp.eq.s32.totalorder %s4171_s28, 0 }
 0x204   : > { %3913 = dma.done.wait (%p4988_p6), [#allocation11], 256   ;;  %p4989_p9 = pmov %p4988_p6 }
 0x205   : > { %p4990_p7 = pmov %p4988_p6 }
 0x206   : > { %3915 = vsyncadd (%p4989_p9), [#allocation11], 4294967040 }
 0x207   : > { %3917 = dma.done.wait (%p4990_p7), [#allocation14], 272   ;;  %p4991_p8 = pmov %p4988_p6 }
 0x208   : > { %p4992_p10 = pmov %p4988_p6 }
 0x209   : > { %3919 = vsyncadd (%p4991_p8), [#allocation14], 4294967024 }
 0x20a   : > { %3921 = dma.done.wait (%p4992_p10), [#allocation17], 32   ;;  %p4993_p12 = pmov %p4988_p6 }
 0x20b   : > { %p4994_p2 = pmov %p4988_p6 }
 0x20c   : > { %3923 = vsyncadd (%p4993_p12), [#allocation17], 4294967264 }
 0x20d   : > { %3925 = dma.done.wait (%p4994_p2), [#allocation20], 32   ;;  %p4995_p11 = pmov %p4994_p2 }
 0x20e   : > { %p4996_p1 = pmov %p4994_p2 }
 0x20f   : > { %3927 = vsyncadd (%p4995_p11), [#allocation20], 4294967264 }
 0x210   : > { %3929 = dma.done.wait (%p4996_p1), [#allocation23], 32   ;;  %p4997_p5 = pmov %p4996_p1 }
 0x211   : > { %p4998_p0 = pmov %p4996_p1 }
 0x212   : > { %3931 = vsyncadd (%p4997_p5), [#allocation23], 4294967264 }
 0x213   : > { %3933 = dma.done.wait (%p4998_p0), [#allocation26], 4112   ;;  %p4999_p4 = pmov %p4998_p0 }
 0x214   : > { %p5000_p13 = pmov %p4998_p0 }
 0x215   : > { %3935 = vsyncadd (%p4999_p4), [#allocation26], 4294963184 }
 0x216   : > { %3937 = dma.done.wait (%p5000_p13), [#allocation29], 8192   ;;  %p5001_p3 = pmov %p4998_p0 }
 0x217   : > { %v3984_v0 = vmov 0.0|0.0   ;;  %vm3985_vm0 = vmmov 0   ;;  %v3986_v1 = vmov 0.0   ;;  %s4654_s11 = sshll.u32 %s4171_s28, 7  ;;  %v1060_v2 = vld [vmem:[%s4617_s9] sm:$0xff]  ;;  %v1061_v3 = vld [vmem:[%s4617_s9 + $0x8] sm:$0xff] }
 0x218   : > { %3939 = vsyncadd (%p5001_p3), [#allocation29], 4294959104  ;;  %3062 = vmatprep.subr.bf16.mxu0 %v3984_v0  ;;  %3011 = vmatprep.mubr.msk.f32.mxu0 %vm3985_vm0, %v3986_v1  ;;  %s4660_s30 = sld [smem:[#allocation4 + %s4654_s11]]  ;;  %s917_s24 = sadd.s32 1, %s4654_s11  ;;  %vm1062_vm1 = vcmask 130048   ;;  %v3063_v4 = vpack.c.bf16 %v1061_v3, %v1060_v2  ;;  %v1059_v5 = vld [vmem:[%s4609_s15] sm:$0xff] }
 0x219   : > { %3014 = vmatprep.subr.bf16.mxu1 %v3986_v1  ;;  %3018 = vmatprep.mubr.msk.bf16.mxu1 %vm3985_vm0, %v3986_v1  ;;  %s4663_s8 = sld [smem:[#allocation5 + %s4654_s11]]  ;;  %s937_s17 = sadd.s32 2, %s4654_s11  ;;  %v3260_v6 = vld [vmem:[#allocation12] sm:$0xff]   ;;  %v3262_v8 = vld [vmem:[#allocation12 + $0x8] sm:$0xff]   ;;  %vm908_vm2 = vcmask 253952   ;;  %vm1161_vm3 = vcmask 261120  }
 0x21a   : > { %s4667_s20 = sld [smem:[#allocation4 + %s917_s24]]  ;;  %s957_s18 = sadd.s32 3, %s4654_s11  ;;  %3064 = vmatpush3.bf16.msra.mxu0 %v3063_v4  ;;  %3015 = vmatpush3.bf16.msra.mxu1 %v3260_v6  ;;  %v3264_v52 = vld [vmem:[#allocation13] sm:$0xff]   ;;  %v3265_v55 = vld [vmem:[#allocation13 + $0x8] sm:$0xff]  }
 0x21b   : > { %s4669_s0 = sld [smem:[#allocation5 + %s917_s24]]  ;;  %3022 = vmatprep.subr.bf16.mxu0 %v3986_v1  ;;  %3016 = vmatprep.subr.bf16.mxu1 %v3986_v1 }
 0x21c   : > { %s4671_s14 = sld [smem:[#allocation4 + %s937_s17]] }
 0x21d   : > { %s4673_s29 = sld [smem:[#allocation5 + %s937_s17]]  ;;  %3012 = vmatmul.mubr.msk.f32.vlgmr.msra.gmra.mrb[0].mxu0 %vm1062_vm1, %v1059_v5 }
 0x21e   : > { %s4679_s10 = sld [smem:[#allocation4 + %s957_s18]]  ;;  %p899_p6 = scmp.ne.s32.totalorder %s4660_s30, 0  ;;  %3017 = vmatpush3.bf16.msra.mxu1 %v3262_v8  ;;  %3026 = vmatprep.mubr.msk.bf16.mxu0 %vm3985_vm0, %v3986_v1 }
 0x21f   : > { %s4681_s12 = sld [smem:[#allocation5 + %s957_s18]]  ;;  %p900_p9 = scmp.ne.s32.totalorder %s4663_s8, 0  ;;  %3030 = vmatprep.subr.bf16.mxu1 %v3986_v1 }
 0x220   : > { %s5002_s16 = sld [smem:[#allocation47_spill]]  ;;  %s904_s19 = scalar_lea.vmem %s4617_s9, %s4660_s30 [#allocation10] }
 0x221   : > { %s2809_s21 = sadd.s32 4294967295, %s4663_s8  ;;  %s925_s22 = scalar_lea.vmem %s4617_s9, %s4667_s20 [#allocation10]  ;;  %v905_v10 = vld [vmem:[%s904_s19] sm:$0x1] }
 0x222   : > { %p901_p7 = por %p900_p9, %p899_p6  ;;  %p911_p8 = scmp.gt.s32.totalorder %s2809_s21, 0  ;;  %v926_v13 = vld [vmem:[%s925_s22] sm:$0x1] }
 0x223   : > { %p920_p10 = scmp.ne.s32.totalorder %s4667_s20, 0  ;;  %p921_p12 = scmp.ne.s32.totalorder %s4669_s0, 0 }
 0x224   : > { %s902_s15 = scalar_select %p901_p7, 1, 0 }
 0x225   : > { %s5021_s21 = smov (!%p911_p8, %s2809_s21), 0  ;;  %p4703_p2 = por %p921_p12, %p920_p10 }
 0x226   : > { %v3261_v7 = vld [vmem:[%s5002_s16] sm:$0xff]   ;;  %v3263_v9 = vld [vmem:[%s5002_s16 + $0x8] sm:$0xff]   ;;  %s903_s18 = scvt.s32.f32 %s902_s15  ;;  %s913_s20 = scalar_lea.vmem %s4617_s9, %s5021_s21 [#allocation10] }
 0x227   : > { %3023 = vmatpush3.bf16.msra.mxu0 %v3261_v7  ;;  %s2810_s17 = sadd.s32 4294967295, %s4669_s0  ;;  %v914_v12 = vld [vmem:[%s913_s20] sm:$0x1]  ;;  %p940_p1 = scmp.ne.s32.totalorder %s4671_s14, 0 }
 0x228   : > { %3024 = vmatprep.subr.bf16.mxu0 %v3986_v1  ;;  %v906_v11 = vstv %s903_s18  ;;  %s923_s15 = scalar_select %p4703_p2, 1, 0 }
 0x229   : > { %v907_v14 = vmul.f32 %v906_v11, %v905_v10  ;;  %v915_v15 = vmul.f32 %v914_v12, %v906_v11  ;;  %p931_p11 = scmp.gt.s32.totalorder %s2810_s17, 0  ;;  %p941_p5 = scmp.ne.s32.totalorder %s4673_s29, 0  ;;  %v2827_v10 = vld [vmem:[#allocation15] ss:$0 sm:$0xff] }
 0x22a   : > { %s924_s19 = scvt.s32.f32 %s923_s15  ;;  %s945_s22 = scalar_lea.vmem %s4617_s9, %s4671_s14 [#allocation10] }
 0x22b   : > { %3025 = vmatpush3.bf16.msra.mxu0 %v3263_v9  ;;  %916 = vst.msk [vmem:[#allocation2 + $0x8] sm:$0x1] %vm908_vm2, %v915_v15  ;;  %s5023_s17 = smov (!%p931_p11, %s2810_s17), 0  ;;  %909 = vst.msk [vmem:[#allocation2] sm:$0x1] %vm908_vm2, %v907_v14  ;;  %p942_p0 = por %p941_p5, %p940_p1 }
 0x22c   : > { %3038 = vmatprep.subr.bf16.mxu0 %v3986_v1  ;;  %v927_v16 = vstv %s924_s19  ;;  %s933_s21 = scalar_lea.vmem %s4617_s9, %s5023_s17 [#allocation10]  ;;  %s2811_s0 = sadd.s32 4294967295, %s4673_s29  ;;  %v946_v19 = vld [vmem:[%s945_s22] sm:$0x1] }
 0x22d   : > { %v928_v17 = vmul.f32 %v927_v16, %v926_v13  ;;  %v934_v18 = vld [vmem:[%s933_s21] sm:$0x1]  ;;  %s943_s30 = scalar_select %p942_p0, 1, 0 }
 0x22e   : > { %v935_v20 = vmul.f32 %v934_v18, %v927_v16  ;;  %p951_p4 = scmp.gt.s32.totalorder %s2811_s0, 0  ;;  %p960_p13 = scmp.ne.s32.totalorder %s4679_s10, 0 }
 0x22f   : > { %929 = vst.msk [vmem:[#allocation2 + $0x1] sm:$0x1] %vm908_vm2, %v928_v17  ;;  %s944_s8 = scvt.s32.f32 %s943_s30  ;;  %p961_p3 = scmp.ne.s32.totalorder %s4681_s12, 0  ;;  %v1434_v17 = vld [vmem:[#allocation21] sm:$0x1] }
 0x230   : > { %936 = vst.msk [vmem:[#allocation2 + $0x9] sm:$0x1] %vm908_vm2, %v935_v20  ;;  %s5025_s0 = smov (!%p951_p4, %s2811_s0), 0  ;;  %s965_s14 = scalar_lea.vmem %s4617_s9, %s4679_s10 [#allocation10] }
 0x231   : > { %v947_v21 = vstv %s944_s8  ;;  %p962_p6 = por %p961_p3, %p960_p13  ;;  %s953_s29 = scalar_lea.vmem %s4617_s9, %s5025_s0 [#allocation10]  ;;  %v966_v24 = vld [vmem:[%s965_s14] sm:$0x1] }
 0x232   : > { %v948_v22 = vmul.f32 %v947_v21, %v946_v19  ;;  %s2812_s18 = sadd.s32 4294967295, %s4681_s12  ;;  %v954_v23 = vld [vmem:[%s953_s29] sm:$0x1]  ;;  %s5004_s20 = sadd.s32 4, %s4654_s11 }
 0x233   : > { %s963_s24 = scalar_select %p962_p6, 1, 0  ;;  %v955_v25 = vmul.f32 %v954_v23, %v947_v21 }
 0x234   : > { %p971_p9 = scmp.gt.s32.totalorder %s2812_s18, 0  ;;  %s978_s17 = sld [smem:[#allocation4 + %s5004_s20]]  ;;  %949 = vst.msk [vmem:[#allocation2 + $0x2] sm:$0x1] %vm908_vm2, %v948_v22 }
 0x235   : > { %s964_s15 = scvt.s32.f32 %s963_s24  ;;  %s5005_s19 = smov %s5004_s20  ;;  %956 = vst.msk [vmem:[#allocation2 + $0xa] sm:$0x1] %vm908_vm2, %v955_v25 }
 0x236   : > { %s979_s22 = sld [smem:[#allocation5 + %s5005_s19]]  ;;  %s5027_s18 = smov (!%p971_p9, %s2812_s18), 0 }
 0x237   : > { %v967_v26 = vstv %s964_s15  ;;  %s997_s10 = sadd.s32 5, %s4654_s11  ;;  %s1017_s12 = sadd.s32 6, %s4654_s11 }
 0x238   : > { %v968_v27 = vmul.f32 %v967_v26, %v966_v24  ;;  %s973_s21 = scalar_lea.vmem %s4617_s9, %s5027_s18 [#allocation10]  ;;  %s4740_s0 = sld [smem:[#allocation4 + %s997_s10]] }
 0x239   : > { %v974_v28 = vld [vmem:[%s973_s21] sm:$0x1]  ;;  %s4742_s30 = sld [smem:[#allocation5 + %s997_s10]]  ;;  %s1037_s24 = sadd.s32 7, %s4654_s11 }
 0x23a   : > { %s4744_s8 = sld [smem:[#allocation4 + %s1017_s12]]  ;;  %v975_v29 = vmul.f32 %v974_v28, %v967_v26  ;;  %p980_p7 = scmp.ne.s32.totalorder %s978_s17, 0  ;;  %969 = vst.msk [vmem:[#allocation2 + $0x3] sm:$0x1] %vm908_vm2, %v968_v27 }
 0x23b   : > { %s985_s14 = scalar_lea.vmem %s4617_s9, %s978_s17 [#allocation10]  ;;  %s4749_s18 = sld [smem:[#allocation5 + %s1017_s12]] }
 0x23c   : > { %p981_p8 = scmp.ne.s32.totalorder %s979_s22, 0  ;;  %s2813_s29 = sadd.s32 4294967295, %s979_s22  ;;  %976 = vst.msk [vmem:[#allocation2 + $0xb] sm:$0x1] %vm908_vm2, %v975_v29  ;;  %v986_v30 = vld [vmem:[%s985_s14] sm:$0x1] }
 0x23d   : > { %p991_p10 = scmp.gt.s32.totalorder %s2813_s29, 0 }
 0x23e   : > { %p982_p12 = por %p981_p8, %p980_p7  ;;  %p1000_p2 = scmp.ne.s32.totalorder %s4740_s0, 0 }
 0x23f   : > { %s5029_s29 = smov (!%p991_p10, %s2813_s29), 0  ;;  %p1001_p11 = scmp.ne.s32.totalorder %s4742_s30, 0 }
 0x240   : > { %s983_s20 = scalar_select %p982_p12, 1, 0 }
 0x241   : > { %s993_s17 = scalar_lea.vmem %s4617_s9, %s5029_s29 [#allocation10]  ;;  %s1005_s19 = scalar_lea.vmem %s4617_s9, %s4740_s0 [#allocation10] }
 0x242   : > { %s984_s15 = scvt.s32.f32 %s983_s20  ;;  %v994_v31 = vld [vmem:[%s993_s17] sm:$0x1]  ;;  %s2814_s22 = sadd.s32 4294967295, %s4742_s30 }
 0x243   : > { %p1002_p1 = por %p1001_p11, %p1000_p2  ;;  %p1011_p5 = scmp.gt.s32.totalorder %s2814_s22, 0  ;;  %v1006_v35 = vld [vmem:[%s1005_s19] sm:$0x1] }
 0x244   : > { %v987_v32 = vstv %s984_s15  ;;  %p1020_p0 = scmp.ne.s32.totalorder %s4744_s8, 0  ;;  %p1021_p4 = scmp.ne.s32.totalorder %s4749_s18, 0 }
 0x245   : > { %v988_v33 = vmul.f32 %v987_v32, %v986_v30  ;;  %v995_v34 = vmul.f32 %v994_v31, %v987_v32  ;;  %s1003_s10 = scalar_select %p1002_p1, 1, 0 }
 0x246   : > { %s5031_s22 = smov (!%p1011_p5, %s2814_s22), 0  ;;  %p1022_p13 = por %p1021_p4, %p1020_p0 }
 0x247   : > { %996 = vst.msk [vmem:[#allocation2 + $0xc] sm:$0x1] %vm908_vm2, %v995_v34  ;;  %989 = vst.msk [vmem:[#allocation2 + $0x4] sm:$0x1] %vm908_vm2, %v988_v33  ;;  %s1004_s12 = scvt.s32.f32 %s1003_s10  ;;  %s1013_s21 = scalar_lea.vmem %s4617_s9, %s5031_s22 [#allocation10] }
 0x248   : > { %s1025_s0 = scalar_lea.vmem %s4617_s9, %s4744_s8 [#allocation10]  ;;  %v1014_v37 = vld [vmem:[%s1013_s21] sm:$0x1]  ;;  %s2815_s14 = sadd.s32 4294967295, %s4749_s18 }
 0x249   : > { %v1007_v36 = vstv %s1004_s12  ;;  %s1023_s30 = scalar_select %p1022_p13, 1, 0  ;;  %v1026_v38 = vld [vmem:[%s1025_s0] sm:$0x1] }
 0x24a   : > { %v1008_v39 = vmul.f32 %v1007_v36, %v1006_v35  ;;  %v1015_v40 = vmul.f32 %v1014_v37, %v1007_v36  ;;  %s1038_s29 = sld [smem:[#allocation4 + %s1037_s24]]  ;;  %p1031_p3 = scmp.gt.s32.totalorder %s2815_s14, 0  ;;  %v3272_v36 = vld [vmem:[#allocation27] ss:$16 sps:$4 sm:$0xff]   ;;  %v3274_v37 = vld [vmem:[#allocation27 + $0x4] ss:$16 sps:$4 sm:$0xff]  }
 0x24b   : > { %s1024_s20 = scvt.s32.f32 %s1023_s30  ;;  %s1039_s17 = sld [smem:[#allocation5 + %s1037_s24]] }
 0x24c   : > { %1016 = vst.msk [vmem:[#allocation2 + $0xd] sm:$0x1] %vm908_vm2, %v1015_v40  ;;  %1009 = vst.msk [vmem:[#allocation2 + $0x5] sm:$0x1] %vm908_vm2, %v1008_v39  ;;  %s5033_s14 = smov (!%p1031_p3, %s2815_s14), 0  ;;  %s1136_s10 = sld [smem:[#allocation6 + %s4171_s28]] }
 0x24d   : > { %v1027_v41 = vstv %s1024_s20  ;;  %s1033_s8 = scalar_lea.vmem %s4617_s9, %s5033_s14 [#allocation10]  ;;  %s5006_s0 = sld [smem:[#allocation55_spill]]  ;;  %v3278_v39 = vld [vmem:[#allocation27 + $0x20] ss:$16 sps:$4 sm:$0xff]   ;;  %v3286_v40 = vld [vmem:[#allocation27 + $0x44] ss:$16 sps:$4 sm:$0xff]  }
 0x24e   : > { %v1028_v42 = vmul.f32 %v1027_v41, %v1026_v38  ;;  %v1034_v43 = vld [vmem:[%s1033_s8] sm:$0x1]  ;;  %s5007_s20 = sld [smem:[#allocation53_spill]]  ;;  %v3280_v38 = vld [vmem:[#allocation27 + $0x24] ss:$16 sps:$4 sm:$0xff]   ;;  %s5009_s21 = sld [smem:[#allocation63_spill]] }
 0x24f   : > { %v1035_v44 = vmul.f32 %v1034_v43, %v1027_v41  ;;  %v3284_v41 = vld [vmem:[#allocation27 + $0x40] ss:$16 sps:$4 sm:$0xff]   ;;  %s5011_s28 = sshll.u32 %s4603_s5, 3  ;;  %p5013_p12 = scmp.ne.s32.totalorder %s4980_s13, 0 }
 0x250   : > { %p1040_p6 = scmp.ne.s32.totalorder %s1038_s29, 0  ;;  %1029 = vst.msk [vmem:[#allocation2 + $0x6] sm:$0x1] %vm908_vm2, %v1028_v42  ;;  %s1045_s15 = scalar_lea.vmem %s4617_s9, %s1038_s29 [#allocation10]  ;;  %v3292_v42 = vld [vmem:[#allocation27 + $0x64] ss:$16 sps:$4 sm:$0xff]  }
 0x251   : > { %p1041_p9 = scmp.ne.s32.totalorder %s1039_s17, 0  ;;  %s2816_s18 = sadd.s32 4294967295, %s1039_s17  ;;  %1036 = vst.msk [vmem:[#allocation2 + $0xe] sm:$0x1] %vm908_vm2, %v1035_v44  ;;  %v1046_v45 = vld [vmem:[%s1045_s15] sm:$0x1] }
 0x252   : > { %p1051_p7 = scmp.gt.s32.totalorder %s2816_s18, 0  ;;  %s1137_s30 = scalar_lea.vmem %s4617_s9, %s1136_s10 [#allocation10]  ;;  %v3290_v43 = vld [vmem:[#allocation27 + $0x60] ss:$16 sps:$4 sm:$0xff]   ;;  %v3298_v44 = vld [vmem:[#allocation27 + $0x84] ss:$16 sps:$4 sm:$0xff]  }
 0x253   : > { %p1042_p8 = por %p1041_p9, %p1040_p6  ;;  %v3266_v57 = vld [vmem:[%s5006_s0] sm:$0xff]   ;;  %v3267_v60 = vld [vmem:[%s5006_s0 + $0x8] sm:$0xff]   ;;  %s5010_s29 = sld [smem:[#allocation65_spill]] }
 0x254   : > { %s5035_s18 = smov (!%p1051_p7, %s2816_s18), 0  ;;  %v1138_v61 = vld [vmem:[%s1137_s30] sm:$0x1]  ;;  %v3269_v35 = vld [vmem:[%s5007_s20 + $0x8] sm:$0xff]   ;;  %s5012_s15 = sld [smem:[#allocation66_spill]] }
 0x255   : > { %s1043_s24 = scalar_select %p1042_p8, 1, 0  ;;  %v1429_v62 = vpack.c.bf16 %v1138_v61, %v1138_v61  ;;  %v3268_v34 = vld [vmem:[%s5007_s20] sm:$0xff]  }
 0x256   : > { %s1053_s19 = scalar_lea.vmem %s4617_s9, %s5035_s18 [#allocation10]  ;;  %s894_s9 = scalar_lea.vmem [#allocation31], %s5011_s28 }
 0x257   : > { %s1044_s22 = scvt.s32.f32 %s1043_s24  ;;  %v1054_v46 = vld [vmem:[%s1053_s19] sm:$0x1]  ;;  %s5008_s24 = sld [smem:[#allocation59_spill]] }
 0x258   : > { %s2537_s17 = sshll.u32 %s894_s9, 4  ;;  %s3988_s12 = smov [#allocation31]   ;;  %s4840_s17 = int_to_ptr.vmem [resolvable:$true] %s2537_s17 }
 0x259   : > { %v1047_v47 = vstv %s1044_s22  ;;  %s2524_s22 = scalar_lea.sflag [#allocation9], %s4603_s5  ;;  %s3858_s10 = scalar_lea.vmem %s4840_s17, 128 }
 0x25a   : > { %v1048_v48 = vmul.f32 %v1047_v47, %v1046_v45  ;;  %v1055_v49 = vmul.f32 %v1054_v46, %v1047_v47  ;;  %v3296_v45 = vld [vmem:[#allocation27 + $0x80] ss:$16 sps:$4 sm:$0xff]   ;;  %s4838_s19 = scalar_lea.hbm %s5012_s15, %s4654_s11  ;;  %p3859_p10 = scmp.ne.s32.totalorder %s4840_s17, %s3858_s10 }
 0x25c   : > { %1056 = vst.msk [vmem:[#allocation2 + $0xf] sm:$0x1] %vm908_vm2, %v1055_v49  ;;  %1049 = vst.msk [vmem:[#allocation2 + $0x7] sm:$0x1] %vm908_vm2, %v1048_v48  ;;  %p3860_p2 = pnand %p3859_p10, %p5013_p12 }
 0x25e   : > { %p3861_p11 = pneg %p3860_p2 }
 0x263   : > { %v1058_v50 = vld [vmem:[#allocation2 + $0x8] sm:$0xff]  ;;  %v1057_v51 = vld [vmem:[#allocation2] sm:$0xff] }
 0x264   : > { %v1144_v53 = vpack.c.bf16 %v1058_v50, %v1058_v50  ;;  %v1139_v54 = vpack.c.bf16 %v1057_v51, %v1057_v51 }
 0x266   : > { %3019 = vmatmul.mubr.msk.bf16.vlgmr.msra.gmra.mrb[0].mxu1 %vm1161_vm3, %v1144_v53  ;;  %3027 = vmatmul.mubr.msk.bf16.vlgmr.msra.gmra.mrb[4].mxu0 %vm1161_vm3, %v1139_v54  ;;  %v2828_v53 = vld [vmem:[#allocation16] ss:$0 sm:$0xff] }
 0x267   : > { %3031 = vmatpush3.bf16.msra.mxu1 %v3264_v52  ;;  %3034 = vmatprep.mubr.msk.bf16.mxu1 %vm3985_vm0, %v3986_v1 }
 0x268   : > { %3032 = vmatprep.subr.bf16.mxu1 %v3986_v1  ;;  %3042 = vmatprep.mubr.msk.bf16.mxu0 %vm3985_vm0, %v3986_v1 }
 0x269   : > { %3039 = vmatpush3.bf16.msra.mxu0 %v3268_v34 }
 0x26a   : > { %3040 = vmatprep.subr.bf16.mxu0 %v3986_v1 }
 0x26b   : > { %3033 = vmatpush3.bf16.msra.mxu1 %v3265_v55  ;;  %v2829_v55 = vld [vmem:[#allocation18] ss:$0 sm:$0xff] }
 0x26c   : > { %3046 = vmatprep.subr.bf16.mxu1 %v3986_v1 }
 0x26d   : > { %3041 = vmatpush3.bf16.msra.mxu0 %v3269_v35 }
 0x26e   : > { %3054 = vmatprep.subr.bf16.mxu0 %v3986_v1 }
 0x2f0   : > { %v1132_v56 = vpop.f32.mrb[0].mxu0 }
 0x2f1   : > { %v1260_v58 = vpack.c.bf16 %v1132_v56, %v1132_v56  ;;  %v3013_v59 = vpop.f32.mrb[1].mxu0 }
 0x2f2   : > { %v1490_v59 = vld [vmem:[#allocation22] sm:$0x1] }
 0x2f3   : > { %3035 = vmatmul.mubr.msk.bf16.vlgmr.msra.gmra.mrb[4].mxu1 %vm1161_vm3, %v1260_v58 }
 0x2f4   : > { %3047 = vmatpush3.bf16.msra.mxu1 %v3266_v57  ;;  %3050 = vmatprep.mubr.msk.bf16.mxu1 %vm3985_vm0, %v3986_v1 }
 0x2f5   : > { %3048 = vmatprep.subr.bf16.mxu1 %v3986_v1 }
 0x2f8   : > { %3049 = vmatpush3.bf16.msra.mxu1 %v3267_v60 }
 0x2f9   : > { %1764 = vmatprep.subr.bf16.mxu1 %v3274_v37  ;;  %v1515_v37 = vld [vmem:[#allocation25] sm:$0x1] }
 0x2fb   : > { %3051 = vmatmul.mubr.msk.bf16.vlgmr.msra.gmra.mrb[8].mxu1 %vm1161_vm3, %v1429_v62  ;;  %v1491_v62 = vld [vmem:[#allocation24] sm:$0x1] }
 0x2fc   : > { %1765 = vmatpush1.bf16.msra.mxu1 %v3272_v36 }
 0x2fd   : > { %1766 = vmatprep.subr.bf16.mxu1 %v3280_v38 }
 0x300   : > { %1767 = vmatpush1.bf16.msra.mxu1 %v3278_v39 }
 0x301   : > { %1768 = vmatprep.subr.bf16.mxu1 %v3286_v40 }
 0x304   : > { %1769 = vmatpush1.bf16.msra.mxu1 %v3284_v41 }
 0x305   : > { %1770 = vmatprep.subr.bf16.mxu1 %v3292_v42  ;;  %v3320_v42 = vld [vmem:[#allocation28] ss:$16 sps:$4 sm:$0xff]  }
 0x308   : > { %1771 = vmatpush1.bf16.msra.mxu1 %v3290_v43  ;;  %v3323_v43 = vld [vmem:[#allocation28 + $0x8] ss:$16 sps:$4 sm:$0xff]  }
 0x309   : > { %1772 = vmatprep.subr.bf16.mxu1 %v3298_v44 }
 0x30c   : > { %1773 = vmatpush1.bf16.msra.mxu1 %v3296_v45 }
 0x339   : > { %v1199_v63 = vpop.f32.mrb[0].mxu1  ;;  %v1254_v0 = vpop.f32.mrb[4].mxu0 }
 0x33a   : > { %v3020_v2 = vpop.f32.mrb[1].mxu1  ;;  %v1255_v3 = vadd.f32 %v1254_v0, %v1199_v63  ;;  %v3028_v4 = vpop.f32.mrb[5].mxu0 }
 0x33b   : > { %v1202_v5 = vpop.f32.mrb[2].mxu1  ;;  %v1257_v6 = vpop.f32.mrb[6].mxu0  ;;  %v3270_v2 = vld [vmem:[%s5008_s24] sm:$0xff]  }
 0x33c   : > { %v3021_v7 = vpop.f32.mrb[3].mxu1  ;;  %v3029_v8 = vpop.f32.mrb[7].mxu0  ;;  %v3271_v5 = vld [vmem:[%s5008_s24 + $0x8] sm:$0xff]  }
 0x33d   : > { %v3277_v7 = vld [vmem:[#allocation27 + $0xc] ss:$16 sps:$4 sm:$0xff]  }
 0x3c6   : > { %v1314_v9 = vpop.f32.mrb[4].mxu1 }
 0x3c7   : > { %v1320_v11 = vadd.f32 %v1314_v9, %v1255_v3  ;;  %v3036_v12 = vpop.f32.mrb[5].mxu1  ;;  %v3275_v9 = vld [vmem:[#allocation27 + $0x8] ss:$16 sps:$4 sm:$0xff]  }
 0x3c8   : > { %v1317_v13 = vpop.f32.mrb[6].mxu1  ;;  %v3281_v12 = vld [vmem:[#allocation27 + $0x28] ss:$16 sps:$4 sm:$0xff]  }
 0x3c9   : > { %v3037_v14 = vpop.f32.mrb[7].mxu1  ;;  %v1328_v15 = vadd.f32 %v2827_v10, %v1320_v11  ;;  %v3283_v11 = vld [vmem:[#allocation27 + $0x2c] ss:$16 sps:$4 sm:$0xff]  }
 0x3ca   : > { %v3289_v13 = vld [vmem:[#allocation27 + $0x4c] ss:$16 sps:$4 sm:$0xff]   ;;  %v3287_v14 = vld [vmem:[#allocation27 + $0x48] ss:$16 sps:$4 sm:$0xff]  }
 0x3cb   : > { %v1331_v16 = vsel %vm1161_vm3, %v1328_v15, 0.0 }
 0x3cc   : > { %1332 = vadd.xlane.f32.xlu0 %v1331_v16  ;;  %v3293_v16 = vld [vmem:[#allocation27 + $0x68] ss:$16 sps:$4 sm:$0xff]  }
 0x3ce   : > { %v1484_v18 = vpop.f32.mrb[8].mxu1 }
 0x3cf   : > { %v1485_v19 = vadd.f32 %v1484_v18, %v1434_v17  ;;  %v3052_v20 = vpop.f32.mrb[9].mxu1  ;;  %v3299_v17 = vld [vmem:[#allocation27 + $0x88] ss:$16 sps:$4 sm:$0xff]   ;;  %v3304_v18 = vld [vmem:[#allocation27 + $0xa4] ss:$16 sps:$4 sm:$0xff]  }
 0x3d0   : > { %v1487_v21 = vpop.f32.mrb[10].mxu1  ;;  %v3302_v20 = vld [vmem:[#allocation27 + $0xa0] ss:$16 sps:$4 sm:$0xff]   ;;  %1774 = vmatprep.subr.bf16.mxu1 %v3304_v18  ;;  %v3373_v18 = vld [vmem:[#allocation30 + $0xc8] sm:$0xff]  }
 0x3d1   : > { %v3053_v22 = vpop.f32.mrb[11].mxu1  ;;  %v1492_v23 = vsel %vm908_vm2, %v1485_v19, 0.0  ;;  %v3305_v21 = vld [vmem:[#allocation27 + $0xa8] ss:$16 sps:$4 sm:$0xff]   ;;  %1775 = vmatpush1.bf16.msra.mxu1 %v3302_v20 }
 0x3d2   : > { %1493 = vadd.xlane.f32.xlu0 %v1492_v23  ;;  %v3310_v22 = vld [vmem:[#allocation27 + $0xc4] ss:$16 sps:$4 sm:$0xff]   ;;  %v3313_v23 = vld [vmem:[#allocation27 + $0xcc] ss:$16 sps:$4 sm:$0xff]  }
 0x3d3   : > { %1776 = vmatprep.subr.bf16.mxu1 %v3310_v22  ;;  %v3375_v20 = vld [vmem:[#allocation30 + $0x88] sm:$0xff]   ;;  %v3377_v22 = vld [vmem:[#allocation30 + $0xd0] sm:$0xff]  }
 0x459   : > { %v1333_v24 = vpop.xlane.xlu0 %1332 }
 0x45a   : > { %v1335_v25 = vmul.f32 0.03125, %v1333_v24  ;;  %v3308_v24 = vld [vmem:[#allocation27 + $0xc0] ss:$16 sps:$4 sm:$0xff]  }
 0x45b   : > { %1777 = vmatpush1.bf16.msra.mxu1 %v3308_v24  ;;  %v3379_v24 = vld [vmem:[#allocation30 + $0x90] sm:$0xff]  }
 0x45c   : > { %v1336_v26 = vsub.f32 %v1328_v15, %v1335_v25  ;;  %v3295_v15 = vld [vmem:[#allocation27 + $0x6c] ss:$16 sps:$4 sm:$0xff]   ;;  %v3311_v25 = vld [vmem:[#allocation27 + $0xc8] ss:$16 sps:$4 sm:$0xff]  }
 0x45e   : > { %v1337_v27 = vmul.f32 %v1336_v26, %v1336_v26 }
 0x45f   : > { %v1494_v28 = vpop.xlane.xlu0 %1493 }
 0x460   : > { %v1495_v29 = vmul.f32 0.03125, %v1494_v28  ;;  %v1338_v30 = vsel %vm1161_vm3, %v1337_v27, 0.0  ;;  %v3319_v27 = vld [vmem:[#allocation27 + $0xec] ss:$16 sps:$4 sm:$0xff]   ;;  %v3314_v28 = vld [vmem:[#allocation27 + $0xe0] ss:$16 sps:$4 sm:$0xff]  }
 0x461   : > { %1339 = vadd.xlane.f32.xlu1 %v1338_v30  ;;  %v3322_v30 = vld [vmem:[#allocation28 + $0x4] ss:$16 sps:$4 sm:$0xff]  }
 0x462   : > { %v1496_v31 = vsub.f32 %v1485_v19, %v1495_v29  ;;  %v3307_v19 = vld [vmem:[#allocation27 + $0xac] ss:$16 sps:$4 sm:$0xff]   ;;  %v3317_v29 = vld [vmem:[#allocation27 + $0xe8] ss:$16 sps:$4 sm:$0xff]  }
 0x464   : > { %v1497_v32 = vmul.f32 %v1496_v31, %v1496_v31 }
 0x466   : > { %v1498_v33 = vsel %vm908_vm2, %v1497_v32, 0.0  ;;  %v3987_v32 = vmov 0  }
 0x467   : > { %1499 = vadd.xlane.f32.xlu1 %v1498_v33  ;;  %1796 = vmatprep.mubr.bf16.mxu1 %v3987_v32 }
 0x4ee   : > { %v1340_v46 = vpop.xlane.xlu1 %1339 }
 0x4ef   : > { %v1341_v47 = vmul.f32 0.03125, %v1340_v46  ;;  %v3328_v46 = vld [vmem:[#allocation28 + $0x24] ss:$16 sps:$4 sm:$0xff]  }
 0x4f1   : > { %v1342_v48 = vadd.f32 1e-05, %v1341_v47  ;;  %v3331_v47 = vld [vmem:[#allocation28 + $0x2c] ss:$16 sps:$4 sm:$0xff]  }
 0x4f3   : > { %3400 = vrsqrt.f32 %v1342_v48  ;;  %v3326_v48 = vld [vmem:[#allocation28 + $0x20] ss:$16 sps:$4 sm:$0xff]  }
 0x4f4   : > { %v1500_v49 = vpop.xlane.xlu1 %1499 }
 0x4f5   : > { %v1501_v50 = vmul.f32 0.03125, %v1500_v49  ;;  %v3329_v49 = vld [vmem:[#allocation28 + $0x28] ss:$16 sps:$4 sm:$0xff]  }
 0x4f7   : > { %v1502_v51 = vadd.f32 1e-05, %v1501_v50  ;;  %v3334_v50 = vld [vmem:[#allocation28 + $0x44] ss:$16 sps:$4 sm:$0xff]  }
 0x4f9   : > { %3402 = vrsqrt.f32 %v1502_v51  ;;  %v3337_v51 = vld [vmem:[#allocation28 + $0x4c] ss:$16 sps:$4 sm:$0xff]  }
 0x4fd   : > { %v3401_v52 = vpop.eup %3400 }
 0x4fe   : > { %v1344_v54 = vmul.f32 %v3401_v52, %v1336_v26  ;;  %v3316_v26 = vld [vmem:[#allocation27 + $0xe4] ss:$16 sps:$4 sm:$0xff]   ;;  %v3332_v52 = vld [vmem:[#allocation28 + $0x40] ss:$16 sps:$4 sm:$0xff]  }
 0x4ff   : > { %1778 = vmatprep.subr.bf16.mxu1 %v3316_v26  ;;  %v3381_v26 = vld [vmem:[#allocation30 + $0xd8] sm:$0xff]  }
 0x500   : > { %v1351_v56 = vmul.f32 %v2828_v53, %v1344_v54  ;;  %1779 = vmatpush1.bf16.msra.mxu1 %v3314_v28  ;;  %v3335_v53 = vld [vmem:[#allocation28 + $0x48] ss:$16 sps:$4 sm:$0xff]   ;;  %v3340_v54 = vld [vmem:[#allocation28 + $0x64] ss:$16 sps:$4 sm:$0xff]  }
 0x501   : > { %2055 = vmatprep.subr.bf16.mxu1 %v3322_v30  ;;  %v3383_v28 = vld [vmem:[#allocation30 + $0x98] sm:$0xff]   ;;  %v3385_v30 = vld [vmem:[#allocation30 + $0xe0] sm:$0xff]  }
 0x502   : > { %v1358_v57 = vadd.f32 %v2829_v55, %v1351_v56  ;;  %v3343_v55 = vld [vmem:[#allocation28 + $0x6c] ss:$16 sps:$4 sm:$0xff]   ;;  %v3338_v56 = vld [vmem:[#allocation28 + $0x60] ss:$16 sps:$4 sm:$0xff]  }
 0x503   : > { %v3403_v58 = vpop.eup %3402 }
 0x504   : > { %v1504_v60 = vmul.f32 %v3403_v58, %v1496_v31  ;;  %vm1359_vm4 = vcmp.ge.f32.partialorder %v1358_v57, 0.0  ;;  %v1360_v61 = vmul.f32 0.01, %v1358_v57  ;;  %v3325_v31 = vld [vmem:[#allocation28 + $0xc] ss:$16 sps:$4 sm:$0xff]  }
 0x505   : > { %v3346_v58 = vld [vmem:[#allocation28 + $0x84] ss:$16 sps:$4 sm:$0xff]  }
 0x506   : > { %v1505_v63 = vmul.f32 %v1504_v60, %v1490_v59  ;;  %v1361_v0 = vsel %vm1359_vm4, %v1358_v57, %v1360_v61  ;;  %v3341_v57 = vld [vmem:[#allocation28 + $0x68] ss:$16 sps:$4 sm:$0xff]   ;;  %v3349_v59 = vld [vmem:[#allocation28 + $0x8c] ss:$16 sps:$4 sm:$0xff]   ;;  %v3344_v60 = vld [vmem:[#allocation28 + $0x80] ss:$16 sps:$4 sm:$0xff]  }
 0x507   : > { %v1362_v3 = vpack.c.bf16 %v1361_v0, %v1361_v0  ;;  %v3347_v61 = vld [vmem:[#allocation28 + $0x88] ss:$16 sps:$4 sm:$0xff]   ;;  %v3350_v0 = vld [vmem:[#allocation28 + $0xa0] ss:$16 sps:$4 sm:$0xff]  }
 0x508   : > { %v1506_v4 = vadd.f32 %v1505_v63, %v1491_v62  ;;  %v3352_v62 = vld [vmem:[#allocation28 + $0xa4] ss:$16 sps:$4 sm:$0xff]   ;;  %v3355_v63 = vld [vmem:[#allocation28 + $0xac] ss:$16 sps:$4 sm:$0xff]  }
 0x509   : > { %3043 = vmatmul.mubr.msk.bf16.vlgmr.msra.gmra.mrb[8].mxu0 %vm1161_vm3, %v1362_v3  ;;  %v3358_v3 = vld [vmem:[#allocation28 + $0xc4] ss:$16 sps:$4 sm:$0xff]  }
 0x50a   : > { %3055 = vmatpush3.bf16.msra.mxu0 %v3270_v2  ;;  %3058 = vmatprep.mubr.msk.bf16.mxu0 %vm3985_vm0, %v3986_v1  ;;  %vm1507_vm5 = vcmp.ge.f32.partialorder %v1506_v4, 0.0  ;;  %v1508_v6 = vmul.f32 0.01, %v1506_v4  ;;  %v3353_v2 = vld [vmem:[#allocation28 + $0xa8] ss:$16 sps:$4 sm:$0xff]  }
 0x50b   : > { %3056 = vmatprep.subr.bf16.mxu0 %v3986_v1  ;;  %v3301_v1 = vld [vmem:[#allocation27 + $0x8c] ss:$16 sps:$4 sm:$0xff]  }
 0x50c   : > { %v1509_v8 = vsel %vm1507_vm5, %v1506_v4, %v1508_v6  ;;  %v3361_v4 = vld [vmem:[#allocation28 + $0xcc] ss:$16 sps:$4 sm:$0xff]   ;;  %v3359_v6 = vld [vmem:[#allocation28 + $0xc8] ss:$16 sps:$4 sm:$0xff]  }
 0x50d   : > { %v1510_v10 = vpack.c.bf16 %v1509_v8, %v1509_v8  ;;  %v3367_v8 = vld [vmem:[#allocation28 + $0xec] ss:$16 sps:$4 sm:$0xff]  }
 0x50e   : > { %3057 = vmatpush3.bf16.msra.mxu0 %v3271_v5  ;;  %v3356_v5 = vld [vmem:[#allocation28 + $0xc0] ss:$16 sps:$4 sm:$0xff]  }
 0x50f   : > { %1805 = vmatprep.subr.bf16.mxu0 %v3277_v7  ;;  %v3364_v7 = vld [vmem:[#allocation28 + $0xe4] ss:$16 sps:$4 sm:$0xff]  }
 0x511   : > { %3059 = vmatmul.mubr.msk.bf16.vlgmr.msra.gmra.mrb[12].mxu0 %vm1161_vm3, %v1510_v10  ;;  %v3362_v10 = vld [vmem:[#allocation28 + $0xe0] ss:$16 sps:$4 sm:$0xff]  }
 0x512   : > { %1806 = vmatpush1.bf16.msra.mxu0 %v3275_v9  ;;  %1837 = vmatprep.mubr.bf16.mxu0 %v3987_v32  ;;  %v2830_v9 = vld [vmem:[#allocation19] ss:$0 sm:$0xff] }
 0x513   : > { %1807 = vmatprep.subr.bf16.mxu0 %v3283_v11  ;;  %v3365_v11 = vld [vmem:[#allocation28 + $0xe8] ss:$16 sps:$4 sm:$0xff]  }
 0x516   : > { %1808 = vmatpush1.bf16.msra.mxu0 %v3281_v12 }
 0x517   : > { %1809 = vmatprep.subr.bf16.mxu0 %v3289_v13 }
 0x51a   : > { %1810 = vmatpush1.bf16.msra.mxu0 %v3287_v14  ;;  %v3368_v14 = vld [vmem:[#allocation30 + $0x40] sm:$0xff]  }
 0x51b   : > { %1811 = vmatprep.subr.bf16.mxu0 %v3295_v15  ;;  %v3369_v15 = vld [vmem:[#allocation30 + $0xc0] sm:$0xff]  }
 0x51e   : > { %1812 = vmatpush1.bf16.msra.mxu0 %v3293_v16  ;;  %v3370_v16 = vld [vmem:[#allocation30] sm:$0xff]  }
 0x51f   : > { %1813 = vmatprep.subr.bf16.mxu0 %v3301_v1  ;;  %v3371_v1 = vld [vmem:[#allocation30 + $0x80] sm:$0xff]  }
 0x522   : > { %1814 = vmatpush1.bf16.msra.mxu0 %v3299_v17  ;;  %v3372_v17 = vld [vmem:[#allocation30 + $0x48] sm:$0xff]  }
 0x523   : > { %1815 = vmatprep.subr.bf16.mxu0 %v3307_v19  ;;  %v3374_v19 = vld [vmem:[#allocation30 + $0x8] sm:$0xff]  }
 0x526   : > { %1816 = vmatpush1.bf16.msra.mxu0 %v3305_v21  ;;  %v3376_v21 = vld [vmem:[#allocation30 + $0x50] sm:$0xff]  }
 0x527   : > { %1817 = vmatprep.subr.bf16.mxu0 %v3313_v23  ;;  %v3378_v23 = vld [vmem:[#allocation30 + $0x10] sm:$0xff]  }
 0x52a   : > { %1818 = vmatpush1.bf16.msra.mxu0 %v3311_v25  ;;  %v3380_v25 = vld [vmem:[#allocation30 + $0x58] sm:$0xff]  }
 0x52b   : > { %1819 = vmatprep.subr.bf16.mxu0 %v3319_v27  ;;  %v3382_v27 = vld [vmem:[#allocation30 + $0x18] sm:$0xff]  }
 0x52e   : > { %1820 = vmatpush1.bf16.msra.mxu0 %v3317_v29  ;;  %v3384_v29 = vld [vmem:[#allocation30 + $0x60] sm:$0xff]  }
 0x52f   : > { %2096 = vmatprep.subr.bf16.mxu0 %v3325_v31  ;;  %v3386_v31 = vld [vmem:[#allocation30 + $0x20] sm:$0xff]  }
 0x5dc   : > { %v4823_v33 = vpop.f32.mrb[8].mxu0 }
 0x5dd   : > { %v3044_v34 = vpop.f32.mrb[9].mxu0  ;;  %v1424_v12 = vadd.f32 %v2830_v9, %v4823_v33  ;;  %v3388_v33 = vld [vmem:[#allocation30 + $0x68] sm:$0xff]  }
 0x5de   : > { %v1426_v35 = vpop.f32.mrb[10].mxu0  ;;  %v3389_v34 = vld [vmem:[#allocation30 + $0xe8] sm:$0xff]  }
 0x5df   : > { %v3045_v36 = vpop.f32.mrb[11].mxu0  ;;  %v1846_v13 = vpack.c.bf16 %v1424_v12, %v1424_v12  ;;  %v3390_v35 = vld [vmem:[#allocation30 + $0x28] sm:$0xff]  }
 0x5e0   : > { %v3391_v36 = vld [vmem:[#allocation30 + $0xa8] sm:$0xff]  }
 0x5e4   : > { %v1565_v38 = vpop.f32.mrb[12].mxu0 }
 0x5e5   : > { %v1566_v39 = vadd.f32 %v1565_v38, %v1515_v37  ;;  %v3060_v40 = vpop.f32.mrb[13].mxu0  ;;  %v3392_v37 = vld [vmem:[#allocation30 + $0x70] sm:$0xff]  }
 0x5e6   : > { %v1568_v41 = vpop.f32.mrb[14].mxu0  ;;  %v3393_v38 = vld [vmem:[#allocation30 + $0xf0] sm:$0xff]  }
 0x5e7   : > { %v1571_v44 = vpack.c.bf16 %v1566_v39, %v1566_v39  ;;  %v3061_v45 = vpop.f32.mrb[15].mxu0  ;;  %v3394_v39 = vld [vmem:[#allocation30 + $0x30] sm:$0xff]   ;;  %v3396_v41 = vld [vmem:[#allocation30 + $0x78] sm:$0xff]  }
 0x5e8   : > { %v3395_v40 = vld [vmem:[#allocation30 + $0xb0] sm:$0xff]  }
 0x5e9   : > { %1797 = vmatmul.mubr.bf16.vlgmr.msra.gmra.mrb[12].mxu1 %v1571_v44  ;;  %1838 = vmatmul.mubr.bf16.vlgmr.msra.gmra.mrb[16].mxu0 %v1571_v44  ;;  %v3399_v44 = vld [vmem:[#allocation30 + $0xb8] sm:$0xff]  }
 0x5ea   : > { %2056 = vmatpush1.bf16.msra.mxu1 %v3320_v42  ;;  %2097 = vmatpush1.bf16.msra.mxu0 %v3323_v43  ;;  %v3397_v42 = vld [vmem:[#allocation30 + $0xf8] sm:$0xff]  }
 0x5eb   : > { %2057 = vmatprep.subr.bf16.mxu1 %v3328_v46  ;;  %2098 = vmatprep.subr.bf16.mxu0 %v3331_v47  ;;  %v3398_v43 = vld [vmem:[#allocation30 + $0x38] sm:$0xff]  }
 0x5ec   : > { %2087 = vmatprep.mubr.bf16.mxu1 %v3987_v32  ;;  %2128 = vmatprep.mubr.bf16.mxu0 %v3987_v32  ;;  %v3387_v32 = vld [vmem:[#allocation30 + $0xa0] sm:$0xff]  }
 0x5ee   : > { %2058 = vmatpush1.bf16.msra.mxu1 %v3326_v48  ;;  %2099 = vmatpush1.bf16.msra.mxu0 %v3329_v49 }
 0x5ef   : > { %2059 = vmatprep.subr.bf16.mxu1 %v3334_v50  ;;  %2100 = vmatprep.subr.bf16.mxu0 %v3337_v51 }
 0x5f2   : > { %2060 = vmatpush1.bf16.msra.mxu1 %v3332_v52  ;;  %2101 = vmatpush1.bf16.msra.mxu0 %v3335_v53  ;;  %v1879_v53 = vlaneseq }
 0x5f3   : > { %2061 = vmatprep.subr.bf16.mxu1 %v3340_v54  ;;  %2102 = vmatprep.subr.bf16.mxu0 %v3343_v55 }
 0x5f4   : > { %v1880_v54 = vshrl.u32 %v1879_v53, 7 }
 0x5f6   : > { %2062 = vmatpush1.bf16.msra.mxu1 %v3338_v56  ;;  %2103 = vmatpush1.bf16.msra.mxu0 %v3341_v57  ;;  %v1881_v55 = vsub.s32 0, %v1880_v54  ;;  %v2149_v56 = vsub.s32 2, %v1880_v54  ;;  %v2137_v57 = vld [vmem:[%s5009_s21] sm:$0xf]  ;;  %s3862_s21 = sshll.u32 %s3988_s12, 4  ;;  %s3863_s21 = int_to_ptr.vmem [resolvable:$false] %s3862_s21 }
 0x5f7   : > { %2063 = vmatprep.subr.bf16.mxu1 %v3346_v58  ;;  %2104 = vmatprep.subr.bf16.mxu0 %v3349_v59  ;;  %v2145_v58 = vsub.s32 1, %v1880_v54  ;;  %v2153_v59 = vsub.s32 3, %v1880_v54  ;;  %s3864_s30 = scalar_lea.vmem %s3863_s21, 256  ;;  %p3865_p1 = scmp.lt.s32.totalorder %s4840_s17, %s3863_s21 }
 0x5f8   : > { %p3866_p5 = scmp.lt.s32.totalorder %s3864_s30, %s3858_s10 }
 0x5fa   : > { %2064 = vmatpush1.bf16.msra.mxu1 %v3344_v60  ;;  %2105 = vmatpush1.bf16.msra.mxu0 %v3347_v61  ;;  %p3867_p0 = por %p3866_p5, %p3865_p1 }
 0x5fb   : > { %2065 = vmatprep.subr.bf16.mxu1 %v3352_v62  ;;  %2106 = vmatprep.subr.bf16.mxu0 %v3355_v63  ;;  %v2142_v62 = vrot.slane %v2137_v57, %v1881_v55  ;;  %v2150_v63 = vrot.slane %v2137_v57, %v2149_v56 }
 0x5fc   : > { %p3868_p4 = pnand %p3867_p0, %p3861_p11 }
 0x5fe   : > { %2066 = vmatpush1.bf16.msra.mxu1 %v3350_v0  ;;  %2107 = vmatpush1.bf16.msra.mxu0 %v3353_v2 }
 0x5ff   : > { %2067 = vmatprep.subr.bf16.mxu1 %v3358_v3  ;;  %2108 = vmatprep.subr.bf16.mxu0 %v3361_v4 }
 0x602   : > { %2068 = vmatpush1.bf16.msra.mxu1 %v3356_v5  ;;  %2109 = vmatpush1.bf16.msra.mxu0 %v3359_v6  ;;  %v2146_v5 = vrot.slane %v2137_v57, %v2145_v58  ;;  %v2154_v6 = vrot.slane %v2137_v57, %v2153_v59 }
 0x603   : > { %2069 = vmatprep.subr.bf16.mxu1 %v3364_v7  ;;  %2110 = vmatprep.subr.bf16.mxu0 %v3367_v8 }
 0x606   : > { %2070 = vmatpush1.bf16.msra.mxu1 %v3362_v10  ;;  %2111 = vmatpush1.bf16.msra.mxu0 %v3365_v11 }
 0x607   : > { %2963 = vmatprep.subr.bf16.mxu1 %v3368_v14  ;;  %2985 = vmatprep.subr.bf16.mxu0 %v3369_v15 }
 0x609   : > { %2088 = vmatmul.mubr.bf16.vlgmr.msra.gmra.mrb[16].mxu1 %v1846_v13  ;;  %2129 = vmatmul.mubr.bf16.vlgmr.msra.gmra.mrb[20].mxu0 %v1846_v13 }
 0x60a   : > { %2964 = vmatpush3.bf16.msra.mxu1 %v3370_v16  ;;  %2986 = vmatpush3.bf16.msra.mxu0 %v3371_v1 }
 0x60b   : > { %2965 = vmatprep.subr.bf16.mxu1 %v3372_v17  ;;  %2987 = vmatprep.subr.bf16.mxu0 %v3373_v18 }
 0x60e   : > { %2966 = vmatpush3.bf16.msra.mxu1 %v3374_v19  ;;  %2988 = vmatpush3.bf16.msra.mxu0 %v3375_v20 }
 0x60f   : > { %2967 = vmatprep.subr.bf16.mxu1 %v3376_v21  ;;  %2989 = vmatprep.subr.bf16.mxu0 %v3377_v22 }
 0x612   : > { %2968 = vmatpush3.bf16.msra.mxu1 %v3378_v23  ;;  %2990 = vmatpush3.bf16.msra.mxu0 %v3379_v24 }
 0x613   : > { %2969 = vmatprep.subr.bf16.mxu1 %v3380_v25  ;;  %2991 = vmatprep.subr.bf16.mxu0 %v3381_v26 }
 0x616   : > { %2970 = vmatpush3.bf16.msra.mxu1 %v3382_v27  ;;  %2992 = vmatpush3.bf16.msra.mxu0 %v3383_v28 }
 0x617   : > { %2971 = vmatprep.subr.bf16.mxu1 %v3384_v29  ;;  %2993 = vmatprep.subr.bf16.mxu0 %v3385_v30 }
 0x61a   : > { %2972 = vmatpush3.bf16.msra.mxu1 %v3386_v31  ;;  %2994 = vmatpush3.bf16.msra.mxu0 %v3387_v32 }
 0x61b   : > { %2973 = vmatprep.subr.bf16.mxu1 %v3388_v33  ;;  %2995 = vmatprep.subr.bf16.mxu0 %v3389_v34  ;;  %v2904_v34 = vld [vmem:[%s5010_s29] ss:$0 sm:$0xff] }
 0x61e   : > { %2974 = vmatpush3.bf16.msra.mxu1 %v3390_v35  ;;  %2996 = vmatpush3.bf16.msra.mxu0 %v3391_v36 }
 0x61f   : > { %2975 = vmatprep.subr.bf16.mxu1 %v3392_v37  ;;  %2997 = vmatprep.subr.bf16.mxu0 %v3393_v38 }
 0x622   : > { %2976 = vmatpush3.bf16.msra.mxu1 %v3394_v39  ;;  %2998 = vmatpush3.bf16.msra.mxu0 %v3395_v40 }
 0x623   : > { %2977 = vmatprep.subr.bf16.mxu1 %v3396_v41  ;;  %2999 = vmatprep.subr.bf16.mxu0 %v3397_v42 }
 0x626   : > { %2978 = vmatpush3.bf16.msra.mxu1 %v3398_v43  ;;  %3000 = vmatpush3.bf16.msra.mxu0 %v3399_v44 }
 0x6bc   : > { %v1798_v45 = vpop.f32.mrb[12].mxu1  ;;  %v1839_v46 = vpop.f32.mrb[16].mxu0 }
 0x6bd   : > { %v1800_v47 = vpop.f32.mrb[13].mxu1  ;;  %v1841_v48 = vpop.f32.mrb[17].mxu0  ;;  %v1882_v60 = vrot.slane %v1798_v45, %v1881_v55  ;;  %v1890_v61 = vrot.slane %v1839_v46, %v1881_v55 }
 0x6be   : > { %v1802_v49 = vpop.f32.mrb[14].mxu1  ;;  %v1843_v50 = vpop.f32.mrb[18].mxu0  ;;  %v1886_v0 = vrot.slane %v1800_v47, %v1881_v55  ;;  %v1894_v2 = vrot.slane %v1841_v48, %v1881_v55 }
 0x6bf   : > { %v1803_v51 = vpop.f32.mrb[15].mxu1  ;;  %v1844_v52 = vpop.f32.mrb[19].mxu0 }
 0x6dc   : > { %v2089_v3 = vpop.f32.mrb[16].mxu1  ;;  %v2130_v4 = vpop.f32.mrb[20].mxu0 }
 0x6dd   : > { %v2090_v7 = vadd.f32 %v2089_v3, %v1882_v60  ;;  %v2131_v8 = vadd.f32 %v2130_v4, %v1890_v61  ;;  %v2091_v9 = vpop.f32.mrb[17].mxu1  ;;  %v2132_v10 = vpop.f32.mrb[21].mxu0 }
 0x6de   : > { %v2092_v11 = vadd.f32 %v2091_v9, %v1886_v0  ;;  %v2133_v12 = vadd.f32 %v2132_v10, %v1894_v2  ;;  %v2093_v13 = vpop.f32.mrb[18].mxu1  ;;  %v2134_v14 = vpop.f32.mrb[22].mxu0 }
 0x6df   : > { %v2159_v15 = vadd.f32 %v2142_v62, %v2090_v7  ;;  %v2161_v16 = vadd.f32 %v2150_v63, %v2131_v8  ;;  %v2094_v1 = vpop.f32.mrb[19].mxu1  ;;  %v2135_v17 = vpop.f32.mrb[23].mxu0 }
 0x6e0   : > { %v2160_v18 = vadd.f32 %v2146_v5, %v2092_v11  ;;  %v2162_v19 = vadd.f32 %v2154_v6, %v2133_v12 }
 0x6e1   : > { %vm2163_vm6 = vcmp.ge.f32.partialorder %v2159_v15, 0.0  ;;  %v2167_v20 = vmul.f32 0.01, %v2159_v15  ;;  %vm2165_vm7 = vcmp.ge.f32.partialorder %v2161_v16, 0.0  ;;  %v2169_v21 = vmul.f32 0.01, %v2161_v16 }
 0x6e2   : > { %v2168_v22 = vmul.f32 0.01, %v2160_v18  ;;  %v2170_v23 = vmul.f32 0.01, %v2162_v19  ;;  %vm2164_vm8 = vcmp.ge.f32.partialorder %v2160_v18, 0.0  ;;  %vm2166_vm9 = vcmp.ge.f32.partialorder %v2162_v19, 0.0 }
 0x6e3   : > { %v2171_v24 = vsel %vm2163_vm6, %v2159_v15, %v2167_v20  ;;  %v2173_v25 = vsel %vm2165_vm7, %v2161_v16, %v2169_v21 }
 0x6e4   : > { %v2172_v26 = vsel %vm2164_vm8, %v2160_v18, %v2168_v22  ;;  %v2174_v27 = vsel %vm2166_vm9, %v2162_v19, %v2170_v23  ;;  %v2175_v30 = vpack.c.bf16 %v2171_v24, %v2171_v24  ;;  %v2177_v31 = vpack.c.bf16 %v2173_v25, %v2173_v25 }
 0x6e5   : > { %v2176_v28 = vpack.c.bf16 %v2172_v26, %v2172_v26  ;;  %v2178_v29 = vpack.c.bf16 %v2174_v27, %v2174_v27 }
 0x6e7   : > { %2474 = vmatprep.mubr.bf16.mxu1 %v2176_v28  ;;  %2514 = vmatprep.mubr.bf16.mxu0 %v2178_v29 }
 0x6e8   : > { %2475 = vmatmul.mubr.bf16.vlgmr.msra.gmra.mrb[20].mxu1 %v2175_v30  ;;  %2515 = vmatmul.mubr.bf16.vlgmr.msra.gmra.mrb[24].mxu0 %v2177_v31 }
 0x7bb   : > { %v2979_v32 = vpop.f32.mrb[20].mxu1  ;;  %v3001_v33 = vpop.f32.mrb[24].mxu0 }
 0x7bc   : > { %v2980_v35 = vpop.f32.mrb[21].mxu1  ;;  %v3002_v36 = vpop.f32.mrb[25].mxu0 }
 0x7bd   : > { %v2981_v37 = vadd.f32 %v2980_v35, %v2979_v32  ;;  %v3003_v38 = vadd.f32 %v3002_v36, %v3001_v33  ;;  %v2982_v39 = vpop.f32.mrb[22].mxu1  ;;  %v3004_v40 = vpop.f32.mrb[26].mxu0 }
 0x7be   : > { %v2983_v41 = vpop.f32.mrb[23].mxu1  ;;  %v3005_v42 = vpop.f32.mrb[27].mxu0 }
 0x7bf   : > { %v2477_v43 = vadd.f32 %v2981_v37, %v2904_v34 }
 0x7c1   : > { %v2517_v44 = vadd.f32 %v3003_v38, %v2477_v43 }
 0x7c3   : > { %2522 = vst [vmem:[%s894_s9] sm:$0xff] %v2517_v44 }
 0x7c4   : > { %3871 = shalt.err (!%p3868_p4)
}
 0x7c5   : > { %s3872_s5 = scalar_lea.hbm %s4838_s19, 128  ;;  %s3876_s29 = scalar_lea.hbm %s5012_s15, 256 }
 0x7c6   : > { %p3873_p13 = scmp.ne.s32.totalorder %s4838_s19, %s3872_s5  ;;  %p3877_p9 = scmp.lt.u32.totalorder %s4838_s19, %s5012_s15 }
 0x7c7   : > { %p3878_p7 = scmp.lt.u32.totalorder %s3876_s29, %s3872_s5  ;;  %p3880_p10 = scmp.lt.u32.totalorder %s3872_s5, %s4838_s19 }
 0x7c8   : > { %p3874_p3 = pnand %p3873_p13, %p5013_p12 }
 0x7c9   : > { %p3879_p8 = por %p3878_p7, %p3877_p9 }
 0x7ca   : > { %p3875_p6 = pneg %p3874_p3 }
 0x7cb   : > { %p3881_p2 = por %p3880_p10, %p3879_p8 }
 0x7cd   : > { %p3882_p11 = pnand %p3881_p2, %p3875_p6 }
 0x7cf   : > { %3885 = shalt.err (!%p3882_p11)
}
 0x7d0   : > { %3121 = dma.vmem_to_hbm [thread:$0]  (%p5013_p12), %s4840_s17, 128, %s4838_s19, %s2524_s22  }
 0x7d1 PF: > { %s2549_s8 = sand.u32 1, %s3946_s1   ;;  %p5014_p1 = scmp.ne.s32.totalorder %s4981_s6, 0 }
 0x7d2   : > { %p5015_p5 = scmp.ge.s32.totalorder %s3958_s7, 2  ;;  %s2550_s18 = scalar_lea.sflag [#allocation9], %s2549_s8 }
 0x7d4   : > { %p3171_p0 = pnand %p5015_p5, %p5014_p1 }
 0x7d6   : > { %3941 = dma.done.wait (!%p3171_p0), %s2550_s18, 128  }
 0x7d7   : > { %3943 = vsyncadd (!%p3171_p0), %s2550_s18, 4294967168  ;;  %p54_p4 = scmp.ge.s32.totalorder %s4491_s27, 4   ;;  %s5016_s1 = smov %s3950_s3 }
 0x7d8   : > { %s5017_s3 = smov %s3954_s2  ;;  %s5018_s2 = smov %s4503_s4 }
 0x7d9   : > { %s5019_s7 = smov %s4491_s27  ;;  %56 = sbr.rel (!%p54_p4) target bundleno = 57 (0x39), region = 231 }
 0x7e0   :  { %2555 = vsyncpa [#allocation8], 1 }
 0x7e1   :  { %2557 = vsyncpa [#allocation8 + $0x1], 1 }
 0x7e2   :  { %2558 = vsyncpa [#allocation11], 1 }
 0x7e3   :  { %2560 = vsyncpa [#allocation11 + $0x1], 1 }
 0x7e4   :  { %2561 = vsyncpa [#allocation14], 1 }
 0x7e5   :  { %2562 = vsyncpa [#allocation17], 1 }
 0x7e6   :  { %2563 = vsyncpa [#allocation20], 1 }
 0x7e7   :  { %2564 = vsyncpa [#allocation23], 1 }
 0x7e8   :  { %2565 = vsyncpa [#allocation26], 1 }
 0x7e9   :  { %2566 = vsyncpa [#allocation29], 1 }
 0x7ea   :  { %2567 = vsyncpa [#allocation9], 1 }
 0x7eb   :  { %2569 = vsyncpa [#allocation9 + $0x1], 1 }

</bundles_post_ra>
